<compile_context>
chip_gen: v7x
topology: tpu7x:2x2x1
jax: 0.10.0
libtpu: 0.0.40
codegen_flags: <defaults>
</compile_context>

<pallas_src>
import functools
import math

import jax
import jax.numpy as jnp
from jax.experimental import pallas as pl
from jax.experimental.pallas import tpu as pltpu


_VMEM_LIMIT = 32 * 1024 * 1024  # explicit scoped-VMEM budget (safe on v5e/v6e/v7x)


# ----------------------------------------------------------------------------
# Tiling helpers
# ----------------------------------------------------------------------------

def _row_tile(m, target=256):
    """Largest multiple-of-8 divisor of m that is <= target (or m itself)."""
    if m <= target:
        return m
    t = target - (target % 8)
    while t >= 8:
        if m % t == 0:
            return t
        t -= 8
    return m


def _col_tile(n, target=512):
    """Largest multiple-of-128 divisor of n that is <= target (or n itself)."""
    if n <= target:
        return n
    t = target - (target % 128)
    while t >= 128:
        if n % t == 0:
            return t
        t -= 128
    return n


def _const_index_map(ndim):
    zeros = (0,) * ndim

    def imap(i):
        return zeros

    return imap


# ----------------------------------------------------------------------------
# Pallas kernels
# ----------------------------------------------------------------------------

def _layer_norm(z, g, b):
    # LayerNorm over last dim, eps = 1e-5 (PyTorch default), fp32 math.
    mu = jnp.mean(z, axis=-1, keepdims=True)
    var = jnp.mean(jnp.square(z - mu), axis=-1, keepdims=True)
    return (z - mu) * jax.lax.rsqrt(var + 1e-5) * g + b


def _qkv_proj_kernel(x_ref, w_ref, b_ref, q_ref, k_ref, v_ref):
    # Packed self-attention QKV projection; emits separate Q/K/V (no XLA slices).
    d = q_ref.shape[-1]
    out = jnp.dot(x_ref[...].astype(jnp.bfloat16), w_ref[...],
                  preferred_element_type=jnp.float32) + b_ref[...]
    q_ref[...] = out[:, :d].astype(q_ref.dtype)
    k_ref[...] = out[:, d:2 * d].astype(k_ref.dtype)
    v_ref[...] = out[:, 2 * d:].astype(v_ref.dtype)


def _kv_proj_kernel(x_ref, w_ref, b_ref, k_ref, v_ref):
    # Packed encoder-attention K/V projection of the encoder memory.
    d = k_ref.shape[-1]
    out = jnp.dot(x_ref[...].astype(jnp.bfloat16), w_ref[...],
                  preferred_element_type=jnp.float32) + b_ref[...]
    k_ref[...] = out[:, :d].astype(k_ref.dtype)
    v_ref[...] = out[:, d:].astype(v_ref.dtype)


def _linear_kernel(x_ref, w_ref, b_ref, o_ref):
    # Generic x @ w + b (used for the final fc_out vocab projection, M/N tiled).
    o_ref[...] = (jnp.dot(x_ref[...].astype(jnp.bfloat16), w_ref[...],
                          preferred_element_type=jnp.float32)
                  + b_ref[...]).astype(o_ref.dtype)


def _o_ln_q_kernel(ctx_ref, res_ref, wo_ref, bo_ref, g_ref, be_ref,
                   wq_ref, bq_ref, x1_ref, q_ref):
    # Fused: self-attn O-proj + residual + LN, then enc-attn Q projection of the LN out.
    y = jnp.dot(ctx_ref[...], wo_ref[...],
                preferred_element_type=jnp.float32) + bo_ref[...]
    x1 = _layer_norm(res_ref[...] + y, g_ref[...], be_ref[...])
    x1_ref[...] = x1
    q_ref[...] = (jnp.dot(x1.astype(jnp.bfloat16), wq_ref[...],
                          preferred_element_type=jnp.float32)
                  + bq_ref[...]).astype(q_ref.dtype)


def _o_ln_ffn_ln_kernel(ctx_ref, res_ref, wo_ref, bo_ref, g1_ref, b1_ref,
                        w1_ref, bf1_ref, w2_ref, bf2_ref, g2_ref, b2_ref, o_ref):
    # Fused: enc-attn O-proj + residual + LN, then FFN (relu) + residual + LN.
    y = jnp.dot(ctx_ref[...], wo_ref[...],
                preferred_element_type=jnp.float32) + bo_ref[...]
    x2 = _layer_norm(res_ref[...] + y, g1_ref[...], b1_ref[...])
    h = jnp.maximum(jnp.dot(x2.astype(jnp.bfloat16), w1_ref[...],
                            preferred_element_type=jnp.float32) + bf1_ref[...], 0.0)
    ff = jnp.dot(h.astype(jnp.bfloat16), w2_ref[...],
                 preferred_element_type=jnp.float32) + bf2_ref[...]
    o_ref[...] = _layer_norm(x2 + ff, g2_ref[...], b2_ref[...])


def _attention_kernel(q_ref, k_ref, v_ref, bias_ref, o_ref, a_ref, *,
                      n_heads, inv_scale):
    # One grid step: one batch element x one Lq tile, all heads.
    #   q:[1,tq,H*Dh] bf16   k/v:[1,Lk,H*Dh] bf16   bias:[1,tq,Lk] fp32 additive
    # Head split happens in VMEM (static lane slices); context output is written
    # already head-merged (lane-dense [tq, H*Dh]).
    d = q_ref.shape[-1]
    dh = d // n_heads
    q = q_ref[0]
    k = k_ref[0]
    v = v_ref[0]
    bias = bias_ref[0]
    ctx_list = []
    for h in range(n_heads):
        sl = slice(h * dh, (h + 1) * dh)
        qh = q[:, sl]
        kh = k[:, sl]
        vh = v[:, sl]
        energy = jax.lax.dot_general(qh, kh, (((1,), (1,)), ((), ())),
                                     preferred_element_type=jnp.float32)
        energy = energy * jnp.float32(inv_scale) + bias
        m = jnp.max(energy, axis=-1, keepdims=True)
        e = jnp.exp(energy - m)
        p = e / jnp.sum(e, axis=-1, keepdims=True)   # exact softmax (fidelity)
        a_ref[0, h] = p                               # module returns attn weights
        ctx_list.append(jnp.dot(p.astype(v.dtype), vh,
                                preferred_element_type=jnp.float32))
    o_ref[0] = jnp.concatenate(ctx_list, axis=-1).astype(o_ref.dtype)


# ----------------------------------------------------------------------------
# pallas_call wrappers
# ----------------------------------------------------------------------------

def _row_call(kernel, row_inputs, resident_inputs, out_shapes, tm=None):
    """Row-tiled pallas_call.

    row_inputs:      [M, *] arrays tiled over rows (pipelined, double-buffered).
    resident_inputs: weights / biases with constant index_map (stay in VMEM).
    out_shapes:      [M, *] outputs tiled over the same rows.
    """
    M = row_inputs[0].shape[0]
    tm = _row_tile(M) if tm is None else tm
    grid = (M // tm,)
    multi = isinstance(out_shapes, (tuple, list))
    outs = tuple(out_shapes) if multi else (out_shapes,)

    in_specs = []
    for a in row_inputs:
        in_specs.append(pl.BlockSpec((tm, a.shape[1]), lambda i: (i, 0)))
    for wgt in resident_inputs:
        in_specs.append(pl.BlockSpec(wgt.shape, _const_index_map(wgt.ndim)))

    out_specs = tuple(pl.BlockSpec((tm, o.shape[1]), lambda i: (i, 0))
                      for o in outs)

    return pl.pallas_call(
        kernel,
        out_shape=outs if multi else outs[0],
        grid=grid,
        in_specs=in_specs,
        out_specs=out_specs if multi else out_specs[0],
        compiler_params=pltpu.CompilerParams(
            dimension_semantics=("parallel",),
            vmem_limit_bytes=_VMEM_LIMIT),
    )(*row_inputs, *resident_inputs)


def linear_mn(x, w, b, out_dtype=jnp.float32):
    """x:[M,Din] @ w:[Din,N] + b, tiled over rows AND output columns (vocab)."""
    M, Din = x.shape
    N = w.shape[1]
    tm = _row_tile(M)
    tn = _col_tile(N)
    return pl.pallas_call(
        _linear_kernel,
        out_shape=jax.ShapeDtypeStruct((M, N), out_dtype),
        grid=(M // tm, N // tn),
        in_specs=[pl.BlockSpec((tm, Din), lambda i, j: (i, 0)),
                  pl.BlockSpec((Din, tn), lambda i, j: (0, j)),
                  pl.BlockSpec((1, tn), lambda i, j: (0, j))],
        out_specs=pl.BlockSpec((tm, tn), lambda i, j: (i, j)),
        compiler_params=pltpu.CompilerParams(
            dimension_semantics=("parallel", "parallel"),
            vmem_limit_bytes=_VMEM_LIMIT),
    )(x, w, b)


def attention(q, k, v, bias, head_dim, n_heads):
    """q:[B,Lq,D] bf16, k/v:[B,Lk,D] bf16, bias:[B,Lq,Lk] fp32 (shared across heads)."""
    B, Lq, D = q.shape
    Lk = k.shape[1]
    tq = _row_tile(Lq, target=256)
    kern = functools.partial(_attention_kernel, n_heads=n_heads,
                             inv_scale=1.0 / math.sqrt(head_dim))
    out, attn = pl.pallas_call(
        kern,
        out_shape=(jax.ShapeDtypeStruct((B, Lq, D), jnp.bfloat16),
                   jax.ShapeDtypeStruct((B, n_heads, Lq, Lk), jnp.float32)),
        grid=(B, Lq // tq),
        in_specs=[pl.BlockSpec((1, tq, D), lambda b, i: (b, i, 0)),
                  pl.BlockSpec((1, Lk, D), lambda b, i: (b, 0, 0)),
                  pl.BlockSpec((1, Lk, D), lambda b, i: (b, 0, 0)),
                  pl.BlockSpec((1, tq, Lk), lambda b, i: (b, i, 0))],
        out_specs=(pl.BlockSpec((1, tq, D), lambda b, i: (b, i, 0)),
                   pl.BlockSpec((1, n_heads, tq, Lk), lambda b, i: (b, 0, i, 0))),
        compiler_params=pltpu.CompilerParams(
            dimension_semantics=("parallel", "parallel"),
            vmem_limit_bytes=_VMEM_LIMIT),
    )(q, k, v, bias)
    return out, attn


# ----------------------------------------------------------------------------
# Model glue (layout plumbing only; all math is inside Pallas kernels)
# ----------------------------------------------------------------------------

def _mask_to_bias(mask, B, Lq, Lk):
    # masked_fill(mask == 0, -1e10)  ->  additive bias shared across heads/layers.
    m = jnp.broadcast_to(mask, (B, 1, Lq, Lk)).reshape(B, Lq, Lk).astype(jnp.float32)
    return jnp.where(m == 0, jnp.float32(-1e10), jnp.float32(0.0))


def decoder_layer(p, x, self_bias, src_bias, src_flat, n_heads):
    B, L, D = x.shape
    M = B * L
    Ms = src_flat.shape[0]
    S = Ms // B
    Dh = D // n_heads
    x_flat = x.reshape(M, D)

    # ---- self-attention: packed QKV projection (single [D,3D] matmul, 3 outputs) ----
    q, k, v = _row_call(
        _qkv_proj_kernel, (x_flat,), (p["self_wqkv"], p["self_bqkv"]),
        tuple(jax.ShapeDtypeStruct((M, D), jnp.bfloat16) for _ in range(3)))
    ctx, self_attn = attention(q.reshape(B, L, D), k.reshape(B, L, D),
                               v.reshape(B, L, D), self_bias, Dh, n_heads)

    # ---- fused: self O-proj + residual + LN, then enc-attn Q projection ----
    x1_flat, q2 = _row_call(
        _o_ln_q_kernel, (ctx.reshape(M, D), x_flat),
        (p["self_wo"], p["self_bo"], p["self_g"], p["self_b"],
         p["enc_wq"], p["enc_bq"]),
        (jax.ShapeDtypeStruct((M, D), jnp.float32),
         jax.ShapeDtypeStruct((M, D), jnp.bfloat16)))

    # ---- enc-attention K/V projection of the encoder memory (packed [D,2D]) ----
    k2, v2 = _row_call(
        _kv_proj_kernel, (src_flat,), (p["enc_wkv"], p["enc_bkv"]),
        (jax.ShapeDtypeStruct((Ms, D), jnp.bfloat16),
         jax.ShapeDtypeStruct((Ms, D), jnp.bfloat16)))

    ctx2, enc_attn = attention(q2.reshape(B, L, D), k2.reshape(B, S, D),
                               v2.reshape(B, S, D), src_bias, Dh, n_heads)

    # ---- fused: enc O-proj + residual + LN, then FFN + residual + LN ----
    x_out = _row_call(
        _o_ln_ffn_ln_kernel, (ctx2.reshape(M, D), x1_flat),
        (p["enc_wo"], p["enc_bo"], p["enc_g"], p["enc_b"],
         p["ff_w1"], p["ff_b1"], p["ff_w2"], p["ff_b2"],
         p["ff_g"], p["ff_b"]),
        jax.ShapeDtypeStruct((M, D), jnp.float32))
    return x_out.reshape(B, L, D), self_attn, enc_attn


def decoder_forward(params, x_tok, mask, src_enc, src_mask, n_heads):
    B, L = x_tok.shape
    D = params["tok_embs"].shape[1]
    S = src_enc.shape[1]
    pos = jnp.arange(L, dtype=jnp.int32)
    # TODO(synk): embedding gathers stay in XLA (data-dependent gather).
    x = jnp.take(params["tok_embs"], x_tok, axis=0) * jnp.sqrt(jnp.float32(D))
    x = x + jnp.take(params["pos_embs"], pos, axis=0)[None]  # dropout = identity (eval)

    self_bias = _mask_to_bias(mask, B, L, L)
    src_bias = _mask_to_bias(src_mask, B, L, S)
    src_flat = src_enc.reshape(B * S, D).astype(jnp.float32)

    self_attns, enc_attns = [], []
    for lp in params["layers"]:
        x, sa, ea = decoder_layer(lp, x, self_bias, src_bias, src_flat, n_heads)
        self_attns.append(sa)
        enc_attns.append(ea)

    M = B * L
    out = linear_mn(x.reshape(M, D), params["fc_out_w"], params["fc_out_b"],
                    out_dtype=jnp.float32)
    return out.reshape(B, L, -1), self_attns, enc_attns


# ----------------------------------------------------------------------------
# Deterministic parameter construction (weights bf16, biases/LN params fp32)
# ----------------------------------------------------------------------------

def _init_linear(key, din, dout):
    w = (jax.random.normal(key, (din, dout), jnp.float32) * 0.02).astype(jnp.bfloat16)
    b = jnp.zeros((1, dout), jnp.float32)
    return w, b


def init_params(key, out_dim, hid_dim, pf_dim, n_layers, n_heads, max_len):
    keys = jax.random.split(key, 3 + n_layers)
    params = {
        "tok_embs": jax.random.normal(keys[0], (out_dim, hid_dim), jnp.float32) * 0.02,
        "pos_embs": jax.random.normal(keys[1], (max_len, hid_dim), jnp.float32) * 0.02,
    }
    params["fc_out_w"], params["fc_out_b"] = _init_linear(keys[2], hid_dim, out_dim)

    layers = []
    for li in range(n_layers):
        lk = jax.random.split(keys[3 + li], 10)
        wq, bq = _init_linear(lk[0], hid_dim, hid_dim)
        wk, bk = _init_linear(lk[1], hid_dim, hid_dim)
        wv, bv = _init_linear(lk[2], hid_dim, hid_dim)
        wo, bo = _init_linear(lk[3], hid_dim, hid_dim)
        ewq, ebq = _init_linear(lk[4], hid_dim, hid_dim)
        ewk, ebk = _init_linear(lk[5], hid_dim, hid_dim)
        ewv, ebv = _init_linear(lk[6], hid_dim, hid_dim)
        ewo, ebo = _init_linear(lk[7], hid_dim, hid_dim)
        ff_w1, ff_b1 = _init_linear(lk[8], hid_dim, pf_dim)
        ff_w2, ff_b2 = _init_linear(lk[9], pf_dim, hid_dim)
        layers.append({
            # self-attention: fc_q/fc_k/fc_v packed into one [D, 3D] matmul
            "self_wqkv": jnp.concatenate([wq, wk, wv], axis=1),
            "self_bqkv": jnp.concatenate([bq, bk, bv], axis=1),
            "self_wo": wo, "self_bo": bo,
            "self_g": jnp.ones((1, hid_dim), jnp.float32),
            "self_b": jnp.zeros((1, hid_dim), jnp.float32),
            # encoder attention: Q on x, packed K/V ([D, 2D]) on src_enc
            "enc_wq": ewq, "enc_bq": ebq,
            "enc_wkv": jnp.concatenate([ewk, ewv], axis=1),
            "enc_bkv": jnp.concatenate([ebk, ebv], axis=1),
            "enc_wo": ewo, "enc_bo": ebo,
            "enc_g": jnp.ones((1, hid_dim), jnp.float32),
            "enc_b": jnp.zeros((1, hid_dim), jnp.float32),
            "ff_w1": ff_w1, "ff_b1": ff_b1, "ff_w2": ff_w2, "ff_b2": ff_b2,
            "ff_g": jnp.ones((1, hid_dim), jnp.float32),
            "ff_b": jnp.zeros((1, hid_dim), jnp.float32),
        })
    params["layers"] = layers
    return params


# ----------------------------------------------------------------------------
# Main
# ----------------------------------------------------------------------------

if __name__ == "__main__":
    OUT_DIM, HID_DIM, PF_DIM = 16, 32, 64
    N_LAYERS, N_HEADS, MAX_LEN = 2, 4, 16
    B, L, SRC_L = 2, 8, 8

    root = jax.random.PRNGKey(0)
    k_params, k_tok, k_src = jax.random.split(root, 3)

    params = init_params(k_params, OUT_DIM, HID_DIM, PF_DIM,
                         N_LAYERS, N_HEADS, MAX_LEN)

    x_tok = jax.random.randint(k_tok, (B, L), 0, OUT_DIM, dtype=jnp.int32)
    src_enc = jax.random.normal(k_src, (B, SRC_L, HID_DIM), jnp.float32)

    # causal self-attention mask [B,1,L,L]; full source mask [B,1,1,SRC_L]
    causal = jnp.tril(jnp.ones((L, L), jnp.float32))
    mask = jnp.broadcast_to(causal, (B, 1, L, L))
    src_mask = jnp.ones((B, 1, 1, SRC_L), jnp.float32)

    fwd = jax.jit(functools.partial(decoder_forward, n_heads=N_HEADS))
    logits, self_attns, enc_attns = fwd(params, x_tok, mask, src_enc, src_mask)
    jax.block_until_ready((logits, self_attns, enc_attns))

    assert logits.shape == (B, L, OUT_DIM)
    assert len(self_attns) == N_LAYERS and self_attns[0].shape == (B, N_HEADS, L, L)
    assert len(enc_attns) == N_LAYERS and enc_attns[0].shape == (B, N_HEADS, L, SRC_L)
    assert bool(jnp.all(jnp.isfinite(logits)))
    print("KERNEL_OK")
</pallas_src>

<mosaic_0001>
module attributes {stable_mosaic.version = 11 : i64} {
  func.func @_o_ln_q_kernel(%arg0: i32, %arg1: memref<16x32xbf16, #tpu.memory_space<vmem>>, %arg2: memref<16x32xf32, #tpu.memory_space<vmem>>, %arg3: memref<32x32xbf16, #tpu.memory_space<vmem>>, %arg4: memref<1x32xf32, #tpu.memory_space<vmem>>, %arg5: memref<1x32xf32, #tpu.memory_space<vmem>>, %arg6: memref<1x32xf32, #tpu.memory_space<vmem>>, %arg7: memref<32x32xbf16, #tpu.memory_space<vmem>>, %arg8: memref<1x32xf32, #tpu.memory_space<vmem>>, %arg9: memref<16x32xf32, #tpu.memory_space<vmem>>, %arg10: memref<16x32xbf16, #tpu.memory_space<vmem>>) attributes {dimension_semantics = [#tpu.dimension_semantics<parallel>], iteration_bounds = array<i64: 1>, scalar_prefetch = 0 : i64, scratch_operands = 0 : i64, tpu.core_type = #tpu.core_type<tc>, window_params = [{transform_indices = @transform_0, window_bounds = array<i64: 16, 32>}, {transform_indices = @transform_1, window_bounds = array<i64: 16, 32>}, {pipeline_mode = #tpu.pipeline_mode<synchronous>, transform_indices = @transform_2, window_bounds = array<i64: 32, 32>}, {pipeline_mode = #tpu.pipeline_mode<synchronous>, transform_indices = @transform_3, window_bounds = array<i64: 1, 32>}, {pipeline_mode = #tpu.pipeline_mode<synchronous>, transform_indices = @transform_4, window_bounds = array<i64: 1, 32>}, {pipeline_mode = #tpu.pipeline_mode<synchronous>, transform_indices = @transform_5, window_bounds = array<i64: 1, 32>}, {pipeline_mode = #tpu.pipeline_mode<synchronous>, transform_indices = @transform_6, window_bounds = array<i64: 32, 32>}, {pipeline_mode = #tpu.pipeline_mode<synchronous>, transform_indices = @transform_7, window_bounds = array<i64: 1, 32>}, {transform_indices = @transform_8, window_bounds = array<i64: 16, 32>}, {transform_indices = @transform_9, window_bounds = array<i64: 16, 32>}]} {
    %c0 = arith.constant 0 : index
    %c0_0 = arith.constant 0 : index
    %0 = vector.load %arg1[%c0, %c0_0] : memref<16x32xbf16, #tpu.memory_space<vmem>>, vector<16x32xbf16>
    %c0_1 = arith.constant 0 : index
    %c0_2 = arith.constant 0 : index
    %1 = vector.load %arg3[%c0_1, %c0_2] : memref<32x32xbf16, #tpu.memory_space<vmem>>, vector<32x32xbf16>
    %cst = arith.constant dense<0.000000e+00> : vector<16x32xf32>
    %2 = tpu.matmul %0, %1, %cst {dimension_numbers = #tpu.dot_dimension_numbers<[1], [0], [0], [1], [0, 0, 1, 1], [], []>} : vector<16x32xbf16>, vector<32x32xbf16>, vector<16x32xf32> -> vector<16x32xf32>
    %c0_3 = arith.constant 0 : index
    %c0_4 = arith.constant 0 : index
    %3 = vector.load %arg4[%c0_3, %c0_4] : memref<1x32xf32, #tpu.memory_space<vmem>>, vector<1x32xf32>
    %4 = vector.broadcast %3 : vector<1x32xf32> to vector<16x32xf32>
    %5 = arith.addf %2, %4 : vector<16x32xf32>
    %c0_5 = arith.constant 0 : index
    %c0_6 = arith.constant 0 : index
    %6 = vector.load %arg2[%c0_5, %c0_6] : memref<16x32xf32, #tpu.memory_space<vmem>>, vector<16x32xf32>
    %7 = arith.addf %6, %5 : vector<16x32xf32>
    %c0_7 = arith.constant 0 : index
    %c0_8 = arith.constant 0 : index
    %8 = vector.load %arg5[%c0_7, %c0_8] : memref<1x32xf32, #tpu.memory_space<vmem>>, vector<1x32xf32>
    %c0_9 = arith.constant 0 : index
    %c0_10 = arith.constant 0 : index
    %9 = vector.load %arg6[%c0_9, %c0_10] : memref<1x32xf32, #tpu.memory_space<vmem>>, vector<1x32xf32>
    %cst_11 = arith.constant dense<0.000000e+00> : vector<16xf32>
    %10 = vector.multi_reduction <add>, %7, %cst_11 [1] : vector<16x32xf32> to vector<16xf32>
    %11 = vector.shape_cast %10 : vector<16xf32> to vector<16x1xf32>
    %cst_12 = arith.constant 3.200000e+01 : f32
    %12 = vector.broadcast %cst_12 : f32 to vector<16x1xf32>
    %13 = arith.divf %11, %12 : vector<16x1xf32>
    %14 = vector.broadcast %13 : vector<16x1xf32> to vector<16x32xf32>
    %15 = arith.subf %7, %14 : vector<16x32xf32>
    %16 = arith.mulf %15, %15 : vector<16x32xf32>
    %cst_13 = arith.constant dense<0.000000e+00> : vector<16xf32>
    %17 = vector.multi_reduction <add>, %16, %cst_13 [1] : vector<16x32xf32> to vector<16xf32>
    %18 = vector.shape_cast %17 : vector<16xf32> to vector<16x1xf32>
    %cst_14 = arith.constant 3.200000e+01 : f32
    %19 = vector.broadcast %cst_14 : f32 to vector<16x1xf32>
    %20 = arith.divf %18, %19 : vector<16x1xf32>
    %21 = vector.broadcast %13 : vector<16x1xf32> to vector<16x32xf32>
    %22 = arith.subf %7, %21 : vector<16x32xf32>
    %cst_15 = arith.constant 9.99999974E-6 : f32
    %23 = vector.broadcast %cst_15 : f32 to vector<16x1xf32>
    %24 = arith.addf %20, %23 : vector<16x1xf32>
    %25 = math.rsqrt %24 : vector<16x1xf32>
    %26 = vector.broadcast %25 : vector<16x1xf32> to vector<16x32xf32>
    %27 = arith.mulf %22, %26 : vector<16x32xf32>
    %28 = vector.broadcast %8 : vector<1x32xf32> to vector<16x32xf32>
    %29 = arith.mulf %27, %28 : vector<16x32xf32>
    %30 = vector.broadcast %9 : vector<1x32xf32> to vector<16x32xf32>
    %31 = arith.addf %29, %30 : vector<16x32xf32>
    %c0_16 = arith.constant 0 : index
    %c0_17 = arith.constant 0 : index
    %32 = vector.load %arg9[%c0_16, %c0_17] : memref<16x32xf32, #tpu.memory_space<vmem>>, vector<16x32xf32>
    tpu.vector_store %arg9[%c0_16, %c0_17], %31 {strides = array<i32>} : memref<16x32xf32, #tpu.memory_space<vmem>>, vector<16x32xf32>,
    %33 = arith.truncf %31 : vector<16x32xf32> to vector<16x32xbf16>
    %c0_18 = arith.constant 0 : index
    %c0_19 = arith.constant 0 : index
    %34 = vector.load %arg7[%c0_18, %c0_19] : memref<32x32xbf16, #tpu.memory_space<vmem>>, vector<32x32xbf16>
    %cst_20 = arith.constant dense<0.000000e+00> : vector<16x32xf32>
    %35 = tpu.matmul %33, %34, %cst_20 {dimension_numbers = #tpu.dot_dimension_numbers<[1], [0], [0], [1], [0, 0, 1, 1], [], []>} : vector<16x32xbf16>, vector<32x32xbf16>, vector<16x32xf32> -> vector<16x32xf32>
    %c0_21 = arith.constant 0 : index
    %c0_22 = arith.constant 0 : index
    %36 = vector.load %arg8[%c0_21, %c0_22] : memref<1x32xf32, #tpu.memory_space<vmem>>, vector<1x32xf32>
    %37 = vector.broadcast %36 : vector<1x32xf32> to vector<16x32xf32>
    %38 = arith.addf %35, %37 : vector<16x32xf32>
    %39 = arith.truncf %38 : vector<16x32xf32> to vector<16x32xbf16>
    %c0_23 = arith.constant 0 : index
    %c0_24 = arith.constant 0 : index
    %40 = vector.load %arg10[%c0_23, %c0_24] : memref<16x32xbf16, #tpu.memory_space<vmem>>, vector<16x32xbf16>
    tpu.vector_store %arg10[%c0_23, %c0_24], %39 {strides = array<i32>} : memref<16x32xbf16, #tpu.memory_space<vmem>>, vector<16x32xbf16>,
    return
  }
  func.func @transform_0(%arg0: i32) -> (i32, i32) {
    %c0_i32 = arith.constant 0 : i32
    %c0_i32_0 = arith.constant 0 : i32
    return %arg0, %c0_i32 : i32, i32
  }
  func.func @transform_1(%arg0: i32) -> (i32, i32) {
    %c0_i32 = arith.constant 0 : i32
    %c0_i32_0 = arith.constant 0 : i32
    return %arg0, %c0_i32 : i32, i32
  }
  func.func @transform_2(%arg0: i32) -> (i32, i32) {
    %c0_i32 = arith.constant 0 : i32
    %c0_i32_0 = arith.constant 0 : i32
    %c0_i32_1 = arith.constant 0 : i32
    return %c0_i32, %c0_i32_0 : i32, i32
  }
  func.func @transform_3(%arg0: i32) -> (i32, i32) {
    %c0_i32 = arith.constant 0 : i32
    %c0_i32_0 = arith.constant 0 : i32
    %c0_i32_1 = arith.constant 0 : i32
    return %c0_i32, %c0_i32_0 : i32, i32
  }
  func.func @transform_4(%arg0: i32) -> (i32, i32) {
    %c0_i32 = arith.constant 0 : i32
    %c0_i32_0 = arith.constant 0 : i32
    %c0_i32_1 = arith.constant 0 : i32
    return %c0_i32, %c0_i32_0 : i32, i32
  }
  func.func @transform_5(%arg0: i32) -> (i32, i32) {
    %c0_i32 = arith.constant 0 : i32
    %c0_i32_0 = arith.constant 0 : i32
    %c0_i32_1 = arith.constant 0 : i32
    return %c0_i32, %c0_i32_0 : i32, i32
  }
  func.func @transform_6(%arg0: i32) -> (i32, i32) {
    %c0_i32 = arith.constant 0 : i32
    %c0_i32_0 = arith.constant 0 : i32
    %c0_i32_1 = arith.constant 0 : i32
    return %c0_i32, %c0_i32_0 : i32, i32
  }
  func.func @transform_7(%arg0: i32) -> (i32, i32) {
    %c0_i32 = arith.constant 0 : i32
    %c0_i32_0 = arith.constant 0 : i32
    %c0_i32_1 = arith.constant 0 : i32
    return %c0_i32, %c0_i32_0 : i32, i32
  }
  func.func @transform_8(%arg0: i32) -> (i32, i32) {
    %c0_i32 = arith.constant 0 : i32
    %c0_i32_0 = arith.constant 0 : i32
    return %arg0, %c0_i32 : i32, i32
  }
  func.func @transform_9(%arg0: i32) -> (i32, i32) {
    %c0_i32 = arith.constant 0 : i32
    %c0_i32_0 = arith.constant 0 : i32
    return %arg0, %c0_i32 : i32, i32
  }
}

module attributes {stable_mosaic.version = 11 : i64} {
  func.func @_qkv_proj_kernel(%arg0: i32, %arg1: memref<16x32xf32, #tpu.memory_space<vmem>>, %arg2: memref<32x96xbf16, #tpu.memory_space<vmem>>, %arg3: memref<1x96xf32, #tpu.memory_space<vmem>>, %arg4: memref<16x32xbf16, #tpu.memory_space<vmem>>, %arg5: memref<16x32xbf16, #tpu.memory_space<vmem>>, %arg6: memref<16x32xbf16, #tpu.memory_space<vmem>>) attributes {dimension_semantics = [#tpu.dimension_semantics<parallel>], iteration_bounds = array<i64: 1>, scalar_prefetch = 0 : i64, scratch_operands = 0 : i64, tpu.core_type = #tpu.core_type<tc>, window_params = [{transform_indices = @transform_0, window_bounds = array<i64: 16, 32>}, {pipeline_mode = #tpu.pipeline_mode<synchronous>, transform_indices = @transform_1, window_bounds = array<i64: 32, 96>}, {pipeline_mode = #tpu.pipeline_mode<synchronous>, transform_indices = @transform_2, window_bounds = array<i64: 1, 96>}, {transform_indices = @transform_3, window_bounds = array<i64: 16, 32>}, {transform_indices = @transform_4, window_bounds = array<i64: 16, 32>}, {transform_indices = @transform_5, window_bounds = array<i64: 16, 32>}]} {
    %c0 = arith.constant 0 : index
    %c0_0 = arith.constant 0 : index
    %0 = vector.load %arg1[%c0, %c0_0] : memref<16x32xf32, #tpu.memory_space<vmem>>, vector<16x32xf32>
    %1 = arith.truncf %0 : vector<16x32xf32> to vector<16x32xbf16>
    %c0_1 = arith.constant 0 : index
    %c0_2 = arith.constant 0 : index
    %2 = vector.load %arg2[%c0_1, %c0_2] : memref<32x96xbf16, #tpu.memory_space<vmem>>, vector<32x96xbf16>
    %cst = arith.constant dense<0.000000e+00> : vector<16x96xf32>
    %3 = tpu.matmul %1, %2, %cst {dimension_numbers = #tpu.dot_dimension_numbers<[1], [0], [0], [1], [0, 0, 1, 1], [], []>} : vector<16x32xbf16>, vector<32x96xbf16>, vector<16x96xf32> -> vector<16x96xf32>
    %c0_3 = arith.constant 0 : index
    %c0_4 = arith.constant 0 : index
    %4 = vector.load %arg3[%c0_3, %c0_4] : memref<1x96xf32, #tpu.memory_space<vmem>>, vector<1x96xf32>
    %5 = vector.broadcast %4 : vector<1x96xf32> to vector<16x96xf32>
    %6 = arith.addf %3, %5 : vector<16x96xf32>
    %7 = vector.extract_strided_slice %6 {offsets = [0, 0], sizes = [16, 32], strides = [1, 1]} : vector<16x96xf32> to vector<16x32xf32>
    %8 = arith.truncf %7 : vector<16x32xf32> to vector<16x32xbf16>
    %c0_5 = arith.constant 0 : index
    %c0_6 = arith.constant 0 : index
    %9 = vector.load %arg4[%c0_5, %c0_6] : memref<16x32xbf16, #tpu.memory_space<vmem>>, vector<16x32xbf16>
    tpu.vector_store %arg4[%c0_5, %c0_6], %8 {strides = array<i32>} : memref<16x32xbf16, #tpu.memory_space<vmem>>, vector<16x32xbf16>,
    %10 = vector.extract_strided_slice %6 {offsets = [0, 32], sizes = [16, 32], strides = [1, 1]} : vector<16x96xf32> to vector<16x32xf32>
    %11 = arith.truncf %10 : vector<16x32xf32> to vector<16x32xbf16>
    %c0_7 = arith.constant 0 : index
    %c0_8 = arith.constant 0 : index
    %12 = vector.load %arg5[%c0_7, %c0_8] : memref<16x32xbf16, #tpu.memory_space<vmem>>, vector<16x32xbf16>
    tpu.vector_store %arg5[%c0_7, %c0_8], %11 {strides = array<i32>} : memref<16x32xbf16, #tpu.memory_space<vmem>>, vector<16x32xbf16>,
    %13 = vector.extract_strided_slice %6 {offsets = [0, 64], sizes = [16, 32], strides = [1, 1]} : vector<16x96xf32> to vector<16x32xf32>
    %14 = arith.truncf %13 : vector<16x32xf32> to vector<16x32xbf16>
    %c0_9 = arith.constant 0 : index
    %c0_10 = arith.constant 0 : index
    %15 = vector.load %arg6[%c0_9, %c0_10] : memref<16x32xbf16, #tpu.memory_space<vmem>>, vector<16x32xbf16>
    tpu.vector_store %arg6[%c0_9, %c0_10], %14 {strides = array<i32>} : memref<16x32xbf16, #tpu.memory_space<vmem>>, vector<16x32xbf16>,
    return
  }
  func.func @transform_0(%arg0: i32) -> (i32, i32) {
    %c0_i32 = arith.constant 0 : i32
    %c0_i32_0 = arith.constant 0 : i32
    return %arg0, %c0_i32 : i32, i32
  }
  func.func @transform_1(%arg0: i32) -> (i32, i32) {
    %c0_i32 = arith.constant 0 : i32
    %c0_i32_0 = arith.constant 0 : i32
    %c0_i32_1 = arith.constant 0 : i32
    return %c0_i32, %c0_i32_0 : i32, i32
  }
  func.func @transform_2(%arg0: i32) -> (i32, i32) {
    %c0_i32 = arith.constant 0 : i32
    %c0_i32_0 = arith.constant 0 : i32
    %c0_i32_1 = arith.constant 0 : i32
    return %c0_i32, %c0_i32_0 : i32, i32
  }
  func.func @transform_3(%arg0: i32) -> (i32, i32) {
    %c0_i32 = arith.constant 0 : i32
    %c0_i32_0 = arith.constant 0 : i32
    return %arg0, %c0_i32 : i32, i32
  }
  func.func @transform_4(%arg0: i32) -> (i32, i32) {
    %c0_i32 = arith.constant 0 : i32
    %c0_i32_0 = arith.constant 0 : i32
    return %arg0, %c0_i32 : i32, i32
  }
  func.func @transform_5(%arg0: i32) -> (i32, i32) {
    %c0_i32 = arith.constant 0 : i32
    %c0_i32_0 = arith.constant 0 : i32
    return %arg0, %c0_i32 : i32, i32
  }
}

module attributes {stable_mosaic.version = 11 : i64} {
  func.func @_kv_proj_kernel(%arg0: i32, %arg1: memref<16x32xf32, #tpu.memory_space<vmem>>, %arg2: memref<32x64xbf16, #tpu.memory_space<vmem>>, %arg3: memref<1x64xf32, #tpu.memory_space<vmem>>, %arg4: memref<16x32xbf16, #tpu.memory_space<vmem>>, %arg5: memref<16x32xbf16, #tpu.memory_space<vmem>>) attributes {dimension_semantics = [#tpu.dimension_semantics<parallel>], iteration_bounds = array<i64: 1>, scalar_prefetch = 0 : i64, scratch_operands = 0 : i64, tpu.core_type = #tpu.core_type<tc>, window_params = [{transform_indices = @transform_0, window_bounds = array<i64: 16, 32>}, {pipeline_mode = #tpu.pipeline_mode<synchronous>, transform_indices = @transform_1, window_bounds = array<i64: 32, 64>}, {pipeline_mode = #tpu.pipeline_mode<synchronous>, transform_indices = @transform_2, window_bounds = array<i64: 1, 64>}, {transform_indices = @transform_3, window_bounds = array<i64: 16, 32>}, {transform_indices = @transform_4, window_bounds = array<i64: 16, 32>}]} {
    %c0 = arith.constant 0 : index
    %c0_0 = arith.constant 0 : index
    %0 = vector.load %arg1[%c0, %c0_0] : memref<16x32xf32, #tpu.memory_space<vmem>>, vector<16x32xf32>
    %1 = arith.truncf %0 : vector<16x32xf32> to vector<16x32xbf16>
    %c0_1 = arith.constant 0 : index
    %c0_2 = arith.constant 0 : index
    %2 = vector.load %arg2[%c0_1, %c0_2] : memref<32x64xbf16, #tpu.memory_space<vmem>>, vector<32x64xbf16>
    %cst = arith.constant dense<0.000000e+00> : vector<16x64xf32>
    %3 = tpu.matmul %1, %2, %cst {dimension_numbers = #tpu.dot_dimension_numbers<[1], [0], [0], [1], [0, 0, 1, 1], [], []>} : vector<16x32xbf16>, vector<32x64xbf16>, vector<16x64xf32> -> vector<16x64xf32>
    %c0_3 = arith.constant 0 : index
    %c0_4 = arith.constant 0 : index
    %4 = vector.load %arg3[%c0_3, %c0_4] : memref<1x64xf32, #tpu.memory_space<vmem>>, vector<1x64xf32>
    %5 = vector.broadcast %4 : vector<1x64xf32> to vector<16x64xf32>
    %6 = arith.addf %3, %5 : vector<16x64xf32>
    %7 = vector.extract_strided_slice %6 {offsets = [0, 0], sizes = [16, 32], strides = [1, 1]} : vector<16x64xf32> to vector<16x32xf32>
    %8 = arith.truncf %7 : vector<16x32xf32> to vector<16x32xbf16>
    %c0_5 = arith.constant 0 : index
    %c0_6 = arith.constant 0 : index
    %9 = vector.load %arg4[%c0_5, %c0_6] : memref<16x32xbf16, #tpu.memory_space<vmem>>, vector<16x32xbf16>
    tpu.vector_store %arg4[%c0_5, %c0_6], %8 {strides = array<i32>} : memref<16x32xbf16, #tpu.memory_space<vmem>>, vector<16x32xbf16>,
    %10 = vector.extract_strided_slice %6 {offsets = [0, 32], sizes = [16, 32], strides = [1, 1]} : vector<16x64xf32> to vector<16x32xf32>
    %11 = arith.truncf %10 : vector<16x32xf32> to vector<16x32xbf16>
    %c0_7 = arith.constant 0 : index
    %c0_8 = arith.constant 0 : index
    %12 = vector.load %arg5[%c0_7, %c0_8] : memref<16x32xbf16, #tpu.memory_space<vmem>>, vector<16x32xbf16>
    tpu.vector_store %arg5[%c0_7, %c0_8], %11 {strides = array<i32>} : memref<16x32xbf16, #tpu.memory_space<vmem>>, vector<16x32xbf16>,
    return
  }
  func.func @transform_0(%arg0: i32) -> (i32, i32) {
    %c0_i32 = arith.constant 0 : i32
    %c0_i32_0 = arith.constant 0 : i32
    return %arg0, %c0_i32 : i32, i32
  }
  func.func @transform_1(%arg0: i32) -> (i32, i32) {
    %c0_i32 = arith.constant 0 : i32
    %c0_i32_0 = arith.constant 0 : i32
    %c0_i32_1 = arith.constant 0 : i32
    return %c0_i32, %c0_i32_0 : i32, i32
  }
  func.func @transform_2(%arg0: i32) -> (i32, i32) {
    %c0_i32 = arith.constant 0 : i32
    %c0_i32_0 = arith.constant 0 : i32
    %c0_i32_1 = arith.constant 0 : i32
    return %c0_i32, %c0_i32_0 : i32, i32
  }
  func.func @transform_3(%arg0: i32) -> (i32, i32) {
    %c0_i32 = arith.constant 0 : i32
    %c0_i32_0 = arith.constant 0 : i32
    return %arg0, %c0_i32 : i32, i32
  }
  func.func @transform_4(%arg0: i32) -> (i32, i32) {
    %c0_i32 = arith.constant 0 : i32
    %c0_i32_0 = arith.constant 0 : i32
    return %arg0, %c0_i32 : i32, i32
  }
}

module attributes {stable_mosaic.version = 11 : i64} {
  func.func @_attention_kernel(%arg0: i32, %arg1: i32, %arg2: memref<1x8x32xbf16, #tpu.memory_space<vmem>>, %arg3: memref<1x8x32xbf16, #tpu.memory_space<vmem>>, %arg4: memref<1x8x32xbf16, #tpu.memory_space<vmem>>, %arg5: memref<1x8x8xf32, #tpu.memory_space<vmem>>, %arg6: memref<1x8x32xbf16, #tpu.memory_space<vmem>>, %arg7: memref<1x4x8x8xf32, #tpu.memory_space<vmem>>) attributes {dimension_semantics = [#tpu.dimension_semantics<parallel>, #tpu.dimension_semantics<parallel>], iteration_bounds = array<i64: 2, 1>, scalar_prefetch = 0 : i64, scratch_operands = 0 : i64, tpu.core_type = #tpu.core_type<tc>, window_params = [{transform_indices = @transform_0, window_bounds = array<i64: 1, 8, 32>}, {transform_indices = @transform_1, window_bounds = array<i64: 1, 8, 32>}, {transform_indices = @transform_2, window_bounds = array<i64: 1, 8, 32>}, {transform_indices = @transform_3, window_bounds = array<i64: 1, 8, 8>}, {transform_indices = @transform_4, window_bounds = array<i64: 1, 8, 32>}, {transform_indices = @transform_5, window_bounds = array<i64: 1, 4, 8, 8>}]} {
    %c0 = arith.constant 0 : index
    %c0_0 = arith.constant 0 : index
    %c0_1 = arith.constant 0 : index
    %0 = vector.load %arg2[%c0, %c0_0, %c0_1] : memref<1x8x32xbf16, #tpu.memory_space<vmem>>, vector<1x8x32xbf16>
    %1 = vector.shape_cast %0 : vector<1x8x32xbf16> to vector<8x32xbf16>
    %c0_2 = arith.constant 0 : index
    %c0_3 = arith.constant 0 : index
    %c0_4 = arith.constant 0 : index
    %2 = vector.load %arg3[%c0_2, %c0_3, %c0_4] : memref<1x8x32xbf16, #tpu.memory_space<vmem>>, vector<1x8x32xbf16>
    %3 = vector.shape_cast %2 : vector<1x8x32xbf16> to vector<8x32xbf16>
    %c0_5 = arith.constant 0 : index
    %c0_6 = arith.constant 0 : index
    %c0_7 = arith.constant 0 : index
    %4 = vector.load %arg4[%c0_5, %c0_6, %c0_7] : memref<1x8x32xbf16, #tpu.memory_space<vmem>>, vector<1x8x32xbf16>
    %5 = vector.shape_cast %4 : vector<1x8x32xbf16> to vector<8x32xbf16>
    %c0_8 = arith.constant 0 : index
    %c0_9 = arith.constant 0 : index
    %c0_10 = arith.constant 0 : index
    %6 = vector.load %arg5[%c0_8, %c0_9, %c0_10] : memref<1x8x8xf32, #tpu.memory_space<vmem>>, vector<1x8x8xf32>
    %7 = vector.shape_cast %6 : vector<1x8x8xf32> to vector<8x8xf32>
    %8 = vector.extract_strided_slice %1 {offsets = [0, 0], sizes = [8, 8], strides = [1, 1]} : vector<8x32xbf16> to vector<8x8xbf16>
    %9 = vector.extract_strided_slice %3 {offsets = [0, 0], sizes = [8, 8], strides = [1, 1]} : vector<8x32xbf16> to vector<8x8xbf16>
    %10 = vector.extract_strided_slice %5 {offsets = [0, 0], sizes = [8, 8], strides = [1, 1]} : vector<8x32xbf16> to vector<8x8xbf16>
    %cst = arith.constant dense<0.000000e+00> : vector<8x8xf32>
    %11 = tpu.matmul %8, %9, %cst {dimension_numbers = #tpu.dot_dimension_numbers<[1], [1], [0], [0], [0, 0, 1, 0], [], []>} : vector<8x8xbf16>, vector<8x8xbf16>, vector<8x8xf32> -> vector<8x8xf32>
    %cst_11 = arith.constant 0.353553385 : f32
    %12 = vector.broadcast %cst_11 : f32 to vector<8x8xf32>
    %13 = arith.mulf %11, %12 : vector<8x8xf32>
    %14 = arith.addf %13, %7 : vector<8x8xf32>
    %cst_12 = arith.constant dense<0xFF800000> : vector<8xf32>
    %15 = vector.multi_reduction <maximumf>, %14, %cst_12 [1] : vector<8x8xf32> to vector<8xf32>
    %16 = vector.shape_cast %15 : vector<8xf32> to vector<8x1xf32>
    %17 = vector.broadcast %16 : vector<8x1xf32> to vector<8x8xf32>
    %18 = arith.subf %14, %17 : vector<8x8xf32>
    %19 = math.exp %18 : vector<8x8xf32>
    %cst_13 = arith.constant dense<0.000000e+00> : vector<8xf32>
    %20 = vector.multi_reduction <add>, %19, %cst_13 [1] : vector<8x8xf32> to vector<8xf32>
    %21 = vector.shape_cast %20 : vector<8xf32> to vector<8x1xf32>
    %22 = vector.broadcast %21 : vector<8x1xf32> to vector<8x8xf32>
    %23 = arith.divf %19, %22 : vector<8x8xf32>
    %c0_14 = arith.constant 0 : index
    %c0_15 = arith.constant 0 : index
    %c0_16 = arith.constant 0 : index
    %c0_17 = arith.constant 0 : index
    %24 = vector.load %arg7[%c0_14, %c0_15, %c0_16, %c0_17] : memref<1x4x8x8xf32, #tpu.memory_space<vmem>>, vector<1x1x8x8xf32>
    %25 = vector.shape_cast %24 : vector<1x1x8x8xf32> to vector<8x8xf32>
    %26 = vector.shape_cast %23 : vector<8x8xf32> to vector<1x1x8x8xf32>
    tpu.vector_store %arg7[%c0_14, %c0_15, %c0_16, %c0_17], %26 {strides = array<i32>} : memref<1x4x8x8xf32, #tpu.memory_space<vmem>>, vector<1x1x8x8xf32>,
    %27 = arith.truncf %23 : vector<8x8xf32> to vector<8x8xbf16>
    %cst_18 = arith.constant dense<0.000000e+00> : vector<8x8xf32>
    %28 = tpu.matmul %27, %10, %cst_18 {dimension_numbers = #tpu.dot_dimension_numbers<[1], [0], [0], [1], [0, 0, 1, 1], [], []>} : vector<8x8xbf16>, vector<8x8xbf16>, vector<8x8xf32> -> vector<8x8xf32>
    %29 = vector.extract_strided_slice %1 {offsets = [0, 8], sizes = [8, 8], strides = [1, 1]} : vector<8x32xbf16> to vector<8x8xbf16>
    %30 = vector.extract_strided_slice %3 {offsets = [0, 8], sizes = [8, 8], strides = [1, 1]} : vector<8x32xbf16> to vector<8x8xbf16>
    %31 = vector.extract_strided_slice %5 {offsets = [0, 8], sizes = [8, 8], strides = [1, 1]} : vector<8x32xbf16> to vector<8x8xbf16>
    %cst_19 = arith.constant dense<0.000000e+00> : vector<8x8xf32>
    %32 = tpu.matmul %29, %30, %cst_19 {dimension_numbers = #tpu.dot_dimension_numbers<[1], [1], [0], [0], [0, 0, 1, 0], [], []>} : vector<8x8xbf16>, vector<8x8xbf16>, vector<8x8xf32> -> vector<8x8xf32>
    %cst_20 = arith.constant 0.353553385 : f32
    %33 = vector.broadcast %cst_20 : f32 to vector<8x8xf32>
    %34 = arith.mulf %32, %33 : vector<8x8xf32>
    %35 = arith.addf %34, %7 : vector<8x8xf32>
    %cst_21 = arith.constant dense<0xFF800000> : vector<8xf32>
    %36 = vector.multi_reduction <maximumf>, %35, %cst_21 [1] : vector<8x8xf32> to vector<8xf32>
    %37 = vector.shape_cast %36 : vector<8xf32> to vector<8x1xf32>
    %38 = vector.broadcast %37 : vector<8x1xf32> to vector<8x8xf32>
    %39 = arith.subf %35, %38 : vector<8x8xf32>
    %40 = math.exp %39 : vector<8x8xf32>
    %cst_22 = arith.constant dense<0.000000e+00> : vector<8xf32>
    %41 = vector.multi_reduction <add>, %40, %cst_22 [1] : vector<8x8xf32> to vector<8xf32>
    %42 = vector.shape_cast %41 : vector<8xf32> to vector<8x1xf32>
    %43 = vector.broadcast %42 : vector<8x1xf32> to vector<8x8xf32>
    %44 = arith.divf %40, %43 : vector<8x8xf32>
    %c0_23 = arith.constant 0 : index
    %c1 = arith.constant 1 : index
    %c0_24 = arith.constant 0 : index
    %c0_25 = arith.constant 0 : index
    %45 = vector.load %arg7[%c0_23, %c1, %c0_24, %c0_25] : memref<1x4x8x8xf32, #tpu.memory_space<vmem>>, vector<1x1x8x8xf32>
    %46 = vector.shape_cast %45 : vector<1x1x8x8xf32> to vector<8x8xf32>
    %47 = vector.shape_cast %44 : vector<8x8xf32> to vector<1x1x8x8xf32>
    tpu.vector_store %arg7[%c0_23, %c1, %c0_24, %c0_25], %47 {strides = array<i32>} : memref<1x4x8x8xf32, #tpu.memory_space<vmem>>, vector<1x1x8x8xf32>,
    %48 = arith.truncf %44 : vector<8x8xf32> to vector<8x8xbf16>
    %cst_26 = arith.constant dense<0.000000e+00> : vector<8x8xf32>
    %49 = tpu.matmul %48, %31, %cst_26 {dimension_numbers = #tpu.dot_dimension_numbers<[1], [0], [0], [1], [0, 0, 1, 1], [], []>} : vector<8x8xbf16>, vector<8x8xbf16>, vector<8x8xf32> -> vector<8x8xf32>
    %50 = vector.extract_strided_slice %1 {offsets = [0, 16], sizes = [8, 8], strides = [1, 1]} : vector<8x32xbf16> to vector<8x8xbf16>
    %51 = vector.extract_strided_slice %3 {offsets = [0, 16], sizes = [8, 8], strides = [1, 1]} : vector<8x32xbf16> to vector<8x8xbf16>
    %52 = vector.extract_strided_slice %5 {offsets = [0, 16], sizes = [8, 8], strides = [1, 1]} : vector<8x32xbf16> to vector<8x8xbf16>
    %cst_27 = arith.constant dense<0.000000e+00> : vector<8x8xf32>
    %53 = tpu.matmul %50, %51, %cst_27 {dimension_numbers = #tpu.dot_dimension_numbers<[1], [1], [0], [0], [0, 0, 1, 0], [], []>} : vector<8x8xbf16>, vector<8x8xbf16>, vector<8x8xf32> -> vector<8x8xf32>
    %cst_28 = arith.constant 0.353553385 : f32
    %54 = vector.broadcast %cst_28 : f32 to vector<8x8xf32>
    %55 = arith.mulf %53, %54 : vector<8x8xf32>
    %56 = arith.addf %55, %7 : vector<8x8xf32>
    %cst_29 = arith.constant dense<0xFF800000> : vector<8xf32>
    %57 = vector.multi_reduction <maximumf>, %56, %cst_29 [1] : vector<8x8xf32> to vector<8xf32>
    %58 = vector.shape_cast %57 : vector<8xf32> to vector<8x1xf32>
    %59 = vector.broadcast %58 : vector<8x1xf32> to vector<8x8xf32>
    %60 = arith.subf %56, %59 : vector<8x8xf32>
    %61 = math.exp %60 : vector<8x8xf32>
    %cst_30 = arith.constant dense<0.000000e+00> : vector<8xf32>
    %62 = vector.multi_reduction <add>, %61, %cst_30 [1] : vector<8x8xf32> to vector<8xf32>
    %63 = vector.shape_cast %62 : vector<8xf32> to vector<8x1xf32>
    %64 = vector.broadcast %63 : vector<8x1xf32> to vector<8x8xf32>
    %65 = arith.divf %61, %64 : vector<8x8xf32>
    %c0_31 = arith.constant 0 : index
    %c2 = arith.constant 2 : index
    %c0_32 = arith.constant 0 : index
    %c0_33 = arith.constant 0 : index
    %66 = vector.load %arg7[%c0_31, %c2, %c0_32, %c0_33] : memref<1x4x8x8xf32, #tpu.memory_space<vmem>>, vector<1x1x8x8xf32>
    %67 = vector.shape_cast %66 : vector<1x1x8x8xf32> to vector<8x8xf32>
    %68 = vector.shape_cast %65 : vector<8x8xf32> to vector<1x1x8x8xf32>
    tpu.vector_store %arg7[%c0_31, %c2, %c0_32, %c0_33], %68 {strides = array<i32>} : memref<1x4x8x8xf32, #tpu.memory_space<vmem>>, vector<1x1x8x8xf32>,
    %69 = arith.truncf %65 : vector<8x8xf32> to vector<8x8xbf16>
    %cst_34 = arith.constant dense<0.000000e+00> : vector<8x8xf32>
    %70 = tpu.matmul %69, %52, %cst_34 {dimension_numbers = #tpu.dot_dimension_numbers<[1], [0], [0], [1], [0, 0, 1, 1], [], []>} : vector<8x8xbf16>, vector<8x8xbf16>, vector<8x8xf32> -> vector<8x8xf32>
    %71 = vector.extract_strided_slice %1 {offsets = [0, 24], sizes = [8, 8], strides = [1, 1]} : vector<8x32xbf16> to vector<8x8xbf16>
    %72 = vector.extract_strided_slice %3 {offsets = [0, 24], sizes = [8, 8], strides = [1, 1]} : vector<8x32xbf16> to vector<8x8xbf16>
    %73 = vector.extract_strided_slice %5 {offsets = [0, 24], sizes = [8, 8], strides = [1, 1]} : vector<8x32xbf16> to vector<8x8xbf16>
    %cst_35 = arith.constant dense<0.000000e+00> : vector<8x8xf32>
    %74 = tpu.matmul %71, %72, %cst_35 {dimension_numbers = #tpu.dot_dimension_numbers<[1], [1], [0], [0], [0, 0, 1, 0], [], []>} : vector<8x8xbf16>, vector<8x8xbf16>, vector<8x8xf32> -> vector<8x8xf32>
    %cst_36 = arith.constant 0.353553385 : f32
    %75 = vector.broadcast %cst_36 : f32 to vector<8x8xf32>
    %76 = arith.mulf %74, %75 : vector<8x8xf32>
    %77 = arith.addf %76, %7 : vector<8x8xf32>
    %cst_37 = arith.constant dense<0xFF800000> : vector<8xf32>
    %78 = vector.multi_reduction <maximumf>, %77, %cst_37 [1] : vector<8x8xf32> to vector<8xf32>
    %79 = vector.shape_cast %78 : vector<8xf32> to vector<8x1xf32>
    %80 = vector.broadcast %79 : vector<8x1xf32> to vector<8x8xf32>
    %81 = arith.subf %77, %80 : vector<8x8xf32>
    %82 = math.exp %81 : vector<8x8xf32>
    %cst_38 = arith.constant dense<0.000000e+00> : vector<8xf32>
    %83 = vector.multi_reduction <add>, %82, %cst_38 [1] : vector<8x8xf32> to vector<8xf32>
    %84 = vector.shape_cast %83 : vector<8xf32> to vector<8x1xf32>
    %85 = vector.broadcast %84 : vector<8x1xf32> to vector<8x8xf32>
    %86 = arith.divf %82, %85 : vector<8x8xf32>
    %c0_39 = arith.constant 0 : index
    %c3 = arith.constant 3 : index
    %c0_40 = arith.constant 0 : index
    %c0_41 = arith.constant 0 : index
    %87 = vector.load %arg7[%c0_39, %c3, %c0_40, %c0_41] : memref<1x4x8x8xf32, #tpu.memory_space<vmem>>, vector<1x1x8x8xf32>
    %88 = vector.shape_cast %87 : vector<1x1x8x8xf32> to vector<8x8xf32>
    %89 = vector.shape_cast %86 : vector<8x8xf32> to vector<1x1x8x8xf32>
    tpu.vector_store %arg7[%c0_39, %c3, %c0_40, %c0_41], %89 {strides = array<i32>} : memref<1x4x8x8xf32, #tpu.memory_space<vmem>>, vector<1x1x8x8xf32>,
    %90 = arith.truncf %86 : vector<8x8xf32> to vector<8x8xbf16>
    %cst_42 = arith.constant dense<0.000000e+00> : vector<8x8xf32>
    %91 = tpu.matmul %90, %73, %cst_42 {dimension_numbers = #tpu.dot_dimension_numbers<[1], [0], [0], [1], [0, 0, 1, 1], [], []>} : vector<8x8xbf16>, vector<8x8xbf16>, vector<8x8xf32> -> vector<8x8xf32>
    %92 = tpu.concatenate %28, %49, %70, %91 in 1 : vector<8x8xf32>, vector<8x8xf32>, vector<8x8xf32>, vector<8x8xf32> -> vector<8x32xf32>
    %93 = arith.truncf %92 : vector<8x32xf32> to vector<8x32xbf16>
    %c0_43 = arith.constant 0 : index
    %c0_44 = arith.constant 0 : index
    %c0_45 = arith.constant 0 : index
    %94 = vector.load %arg6[%c0_43, %c0_44, %c0_45] : memref<1x8x32xbf16, #tpu.memory_space<vmem>>, vector<1x8x32xbf16>
    %95 = vector.shape_cast %94 : vector<1x8x32xbf16> to vector<8x32xbf16>
    %96 = vector.shape_cast %93 : vector<8x32xbf16> to vector<1x8x32xbf16>
    tpu.vector_store %arg6[%c0_43, %c0_44, %c0_45], %96 {strides = array<i32>} : memref<1x8x32xbf16, #tpu.memory_space<vmem>>, vector<1x8x32xbf16>,
    return
  }
  func.func @transform_0(%arg0: i32, %arg1: i32) -> (i32, i32, i32) {
    %c0_i32 = arith.constant 0 : i32
    %c0_i32_0 = arith.constant 0 : i32
    return %arg0, %arg1, %c0_i32 : i32, i32, i32
  }
  func.func @transform_1(%arg0: i32, %arg1: i32) -> (i32, i32, i32) {
    %c0_i32 = arith.constant 0 : i32
    %c0_i32_0 = arith.constant 0 : i32
    %c0_i32_1 = arith.constant 0 : i32
    return %arg0, %c0_i32, %c0_i32_0 : i32, i32, i32
  }
  func.func @transform_2(%arg0: i32, %arg1: i32) -> (i32, i32, i32) {
    %c0_i32 = arith.constant 0 : i32
    %c0_i32_0 = arith.constant 0 : i32
    %c0_i32_1 = arith.constant 0 : i32
    return %arg0, %c0_i32, %c0_i32_0 : i32, i32, i32
  }
  func.func @transform_3(%arg0: i32, %arg1: i32) -> (i32, i32, i32) {
    %c0_i32 = arith.constant 0 : i32
    %c0_i32_0 = arith.constant 0 : i32
    return %arg0, %arg1, %c0_i32 : i32, i32, i32
  }
  func.func @transform_4(%arg0: i32, %arg1: i32) -> (i32, i32, i32) {
    %c0_i32 = arith.constant 0 : i32
    %c0_i32_0 = arith.constant 0 : i32
    return %arg0, %arg1, %c0_i32 : i32, i32, i32
  }
  func.func @transform_5(%arg0: i32, %arg1: i32) -> (i32, i32, i32, i32) {
    %c0_i32 = arith.constant 0 : i32
    %c0_i32_0 = arith.constant 0 : i32
    %c0_i32_1 = arith.constant 0 : i32
    return %arg0, %c0_i32, %arg1, %c0_i32_0 : i32, i32, i32, i32
  }
}

module attributes {stable_mosaic.version = 11 : i64} {
  func.func @_o_ln_ffn_ln_kernel(%arg0: i32, %arg1: memref<16x32xbf16, #tpu.memory_space<vmem>>, %arg2: memref<16x32xf32, #tpu.memory_space<vmem>>, %arg3: memref<32x32xbf16, #tpu.memory_space<vmem>>, %arg4: memref<1x32xf32, #tpu.memory_space<vmem>>, %arg5: memref<1x32xf32, #tpu.memory_space<vmem>>, %arg6: memref<1x32xf32, #tpu.memory_space<vmem>>, %arg7: memref<32x64xbf16, #tpu.memory_space<vmem>>, %arg8: memref<1x64xf32, #tpu.memory_space<vmem>>, %arg9: memref<64x32xbf16, #tpu.memory_space<vmem>>, %arg10: memref<1x32xf32, #tpu.memory_space<vmem>>, %arg11: memref<1x32xf32, #tpu.memory_space<vmem>>, %arg12: memref<1x32xf32, #tpu.memory_space<vmem>>, %arg13: memref<16x32xf32, #tpu.memory_space<vmem>>) attributes {dimension_semantics = [#tpu.dimension_semantics<parallel>], iteration_bounds = array<i64: 1>, scalar_prefetch = 0 : i64, scratch_operands = 0 : i64, tpu.core_type = #tpu.core_type<tc>, window_params = [{transform_indices = @transform_0, window_bounds = array<i64: 16, 32>}, {transform_indices = @transform_1, window_bounds = array<i64: 16, 32>}, {pipeline_mode = #tpu.pipeline_mode<synchronous>, transform_indices = @transform_2, window_bounds = array<i64: 32, 32>}, {pipeline_mode = #tpu.pipeline_mode<synchronous>, transform_indices = @transform_3, window_bounds = array<i64: 1, 32>}, {pipeline_mode = #tpu.pipeline_mode<synchronous>, transform_indices = @transform_4, window_bounds = array<i64: 1, 32>}, {pipeline_mode = #tpu.pipeline_mode<synchronous>, transform_indices = @transform_5, window_bounds = array<i64: 1, 32>}, {pipeline_mode = #tpu.pipeline_mode<synchronous>, transform_indices = @transform_6, window_bounds = array<i64: 32, 64>}, {pipeline_mode = #tpu.pipeline_mode<synchronous>, transform_indices = @transform_7, window_bounds = array<i64: 1, 64>}, {pipeline_mode = #tpu.pipeline_mode<synchronous>, transform_indices = @transform_8, window_bounds = array<i64: 64, 32>}, {pipeline_mode = #tpu.pipeline_mode<synchronous>, transform_indices = @transform_9, window_bounds = array<i64: 1, 32>}, {pipeline_mode = #tpu.pipeline_mode<synchronous>, transform_indices = @transform_10, window_bounds = array<i64: 1, 32>}, {pipeline_mode = #tpu.pipeline_mode<synchronous>, transform_indices = @transform_11, window_bounds = array<i64: 1, 32>}, {transform_indices = @transform_12, window_bounds = array<i64: 16, 32>}]} {
    %c0 = arith.constant 0 : index
    %c0_0 = arith.constant 0 : index
    %0 = vector.load %arg1[%c0, %c0_0] : memref<16x32xbf16, #tpu.memory_space<vmem>>, vector<16x32xbf16>
    %c0_1 = arith.constant 0 : index
    %c0_2 = arith.constant 0 : index
    %1 = vector.load %arg3[%c0_1, %c0_2] : memref<32x32xbf16, #tpu.memory_space<vmem>>, vector<32x32xbf16>
    %cst = arith.constant dense<0.000000e+00> : vector<16x32xf32>
    %2 = tpu.matmul %0, %1, %cst {dimension_numbers = #tpu.dot_dimension_numbers<[1], [0], [0], [1], [0, 0, 1, 1], [], []>} : vector<16x32xbf16>, vector<32x32xbf16>, vector<16x32xf32> -> vector<16x32xf32>
    %c0_3 = arith.constant 0 : index
    %c0_4 = arith.constant 0 : index
    %3 = vector.load %arg4[%c0_3, %c0_4] : memref<1x32xf32, #tpu.memory_space<vmem>>, vector<1x32xf32>
    %4 = vector.broadcast %3 : vector<1x32xf32> to vector<16x32xf32>
    %5 = arith.addf %2, %4 : vector<16x32xf32>
    %c0_5 = arith.constant 0 : index
    %c0_6 = arith.constant 0 : index
    %6 = vector.load %arg2[%c0_5, %c0_6] : memref<16x32xf32, #tpu.memory_space<vmem>>, vector<16x32xf32>
    %7 = arith.addf %6, %5 : vector<16x32xf32>
    %c0_7 = arith.constant 0 : index
    %c0_8 = arith.constant 0 : index
    %8 = vector.load %arg5[%c0_7, %c0_8] : memref<1x32xf32, #tpu.memory_space<vmem>>, vector<1x32xf32>
    %c0_9 = arith.constant 0 : index
    %c0_10 = arith.constant 0 : index
    %9 = vector.load %arg6[%c0_9, %c0_10] : memref<1x32xf32, #tpu.memory_space<vmem>>, vector<1x32xf32>
    %cst_11 = arith.constant dense<0.000000e+00> : vector<16xf32>
    %10 = vector.multi_reduction <add>, %7, %cst_11 [1] : vector<16x32xf32> to vector<16xf32>
    %11 = vector.shape_cast %10 : vector<16xf32> to vector<16x1xf32>
    %cst_12 = arith.constant 3.200000e+01 : f32
    %12 = vector.broadcast %cst_12 : f32 to vector<16x1xf32>
    %13 = arith.divf %11, %12 : vector<16x1xf32>
    %14 = vector.broadcast %13 : vector<16x1xf32> to vector<16x32xf32>
    %15 = arith.subf %7, %14 : vector<16x32xf32>
    %16 = arith.mulf %15, %15 : vector<16x32xf32>
    %cst_13 = arith.constant dense<0.000000e+00> : vector<16xf32>
    %17 = vector.multi_reduction <add>, %16, %cst_13 [1] : vector<16x32xf32> to vector<16xf32>
    %18 = vector.shape_cast %17 : vector<16xf32> to vector<16x1xf32>
    %cst_14 = arith.constant 3.200000e+01 : f32
    %19 = vector.broadcast %cst_14 : f32 to vector<16x1xf32>
    %20 = arith.divf %18, %19 : vector<16x1xf32>
    %21 = vector.broadcast %13 : vector<16x1xf32> to vector<16x32xf32>
    %22 = arith.subf %7, %21 : vector<16x32xf32>
    %cst_15 = arith.constant 9.99999974E-6 : f32
    %23 = vector.broadcast %cst_15 : f32 to vector<16x1xf32>
    %24 = arith.addf %20, %23 : vector<16x1xf32>
    %25 = math.rsqrt %24 : vector<16x1xf32>
    %26 = vector.broadcast %25 : vector<16x1xf32> to vector<16x32xf32>
    %27 = arith.mulf %22, %26 : vector<16x32xf32>
    %28 = vector.broadcast %8 : vector<1x32xf32> to vector<16x32xf32>
    %29 = arith.mulf %27, %28 : vector<16x32xf32>
    %30 = vector.broadcast %9 : vector<1x32xf32> to vector<16x32xf32>
    %31 = arith.addf %29, %30 : vector<16x32xf32>
    %32 = arith.truncf %31 : vector<16x32xf32> to vector<16x32xbf16>
    %c0_16 = arith.constant 0 : index
    %c0_17 = arith.constant 0 : index
    %33 = vector.load %arg7[%c0_16, %c0_17] : memref<32x64xbf16, #tpu.memory_space<vmem>>, vector<32x64xbf16>
    %cst_18 = arith.constant dense<0.000000e+00> : vector<16x64xf32>
    %34 = tpu.matmul %32, %33, %cst_18 {dimension_numbers = #tpu.dot_dimension_numbers<[1], [0], [0], [1], [0, 0, 1, 1], [], []>} : vector<16x32xbf16>, vector<32x64xbf16>, vector<16x64xf32> -> vector<16x64xf32>
    %c0_19 = arith.constant 0 : index
    %c0_20 = arith.constant 0 : index
    %35 = vector.load %arg8[%c0_19, %c0_20] : memref<1x64xf32, #tpu.memory_space<vmem>>, vector<1x64xf32>
    %36 = vector.broadcast %35 : vector<1x64xf32> to vector<16x64xf32>
    %37 = arith.addf %34, %36 : vector<16x64xf32>
    %cst_21 = arith.constant 0.000000e+00 : f32
    %38 = vector.broadcast %cst_21 : f32 to vector<16x64xf32>
    %39 = arith.maximumf %37, %38 : vector<16x64xf32>
    %40 = arith.truncf %39 : vector<16x64xf32> to vector<16x64xbf16>
    %c0_22 = arith.constant 0 : index
    %c0_23 = arith.constant 0 : index
    %41 = vector.load %arg9[%c0_22, %c0_23] : memref<64x32xbf16, #tpu.memory_space<vmem>>, vector<64x32xbf16>
    %cst_24 = arith.constant dense<0.000000e+00> : vector<16x32xf32>
    %42 = tpu.matmul %40, %41, %cst_24 {dimension_numbers = #tpu.dot_dimension_numbers<[1], [0], [0], [1], [0, 0, 1, 1], [], []>} : vector<16x64xbf16>, vector<64x32xbf16>, vector<16x32xf32> -> vector<16x32xf32>
    %c0_25 = arith.constant 0 : index
    %c0_26 = arith.constant 0 : index
    %43 = vector.load %arg10[%c0_25, %c0_26] : memref<1x32xf32, #tpu.memory_space<vmem>>, vector<1x32xf32>
    %44 = vector.broadcast %43 : vector<1x32xf32> to vector<16x32xf32>
    %45 = arith.addf %42, %44 : vector<16x32xf32>
    %46 = arith.addf %31, %45 : vector<16x32xf32>
    %c0_27 = arith.constant 0 : index
    %c0_28 = arith.constant 0 : index
    %47 = vector.load %arg11[%c0_27, %c0_28] : memref<1x32xf32, #tpu.memory_space<vmem>>, vector<1x32xf32>
    %c0_29 = arith.constant 0 : index
    %c0_30 = arith.constant 0 : index
    %48 = vector.load %arg12[%c0_29, %c0_30] : memref<1x32xf32, #tpu.memory_space<vmem>>, vector<1x32xf32>
    %cst_31 = arith.constant dense<0.000000e+00> : vector<16xf32>
    %49 = vector.multi_reduction <add>, %46, %cst_31 [1] : vector<16x32xf32> to vector<16xf32>
    %50 = vector.shape_cast %49 : vector<16xf32> to vector<16x1xf32>
    %cst_32 = arith.constant 3.200000e+01 : f32
    %51 = vector.broadcast %cst_32 : f32 to vector<16x1xf32>
    %52 = arith.divf %50, %51 : vector<16x1xf32>
    %53 = vector.broadcast %52 : vector<16x1xf32> to vector<16x32xf32>
    %54 = arith.subf %46, %53 : vector<16x32xf32>
    %55 = arith.mulf %54, %54 : vector<16x32xf32>
    %cst_33 = arith.constant dense<0.000000e+00> : vector<16xf32>
    %56 = vector.multi_reduction <add>, %55, %cst_33 [1] : vector<16x32xf32> to vector<16xf32>
    %57 = vector.shape_cast %56 : vector<16xf32> to vector<16x1xf32>
    %cst_34 = arith.constant 3.200000e+01 : f32
    %58 = vector.broadcast %cst_34 : f32 to vector<16x1xf32>
    %59 = arith.divf %57, %58 : vector<16x1xf32>
    %60 = vector.broadcast %52 : vector<16x1xf32> to vector<16x32xf32>
    %61 = arith.subf %46, %60 : vector<16x32xf32>
    %cst_35 = arith.constant 9.99999974E-6 : f32
    %62 = vector.broadcast %cst_35 : f32 to vector<16x1xf32>
    %63 = arith.addf %59, %62 : vector<16x1xf32>
    %64 = math.rsqrt %63 : vector<16x1xf32>
    %65 = vector.broadcast %64 : vector<16x1xf32> to vector<16x32xf32>
    %66 = arith.mulf %61, %65 : vector<16x32xf32>
    %67 = vector.broadcast %47 : vector<1x32xf32> to vector<16x32xf32>
    %68 = arith.mulf %66, %67 : vector<16x32xf32>
    %69 = vector.broadcast %48 : vector<1x32xf32> to vector<16x32xf32>
    %70 = arith.addf %68, %69 : vector<16x32xf32>
    %c0_36 = arith.constant 0 : index
    %c0_37 = arith.constant 0 : index
    %71 = vector.load %arg13[%c0_36, %c0_37] : memref<16x32xf32, #tpu.memory_space<vmem>>, vector<16x32xf32>
    tpu.vector_store %arg13[%c0_36, %c0_37], %70 {strides = array<i32>} : memref<16x32xf32, #tpu.memory_space<vmem>>, vector<16x32xf32>,
    return
  }
  func.func @transform_0(%arg0: i32) -> (i32, i32) {
    %c0_i32 = arith.constant 0 : i32
    %c0_i32_0 = arith.constant 0 : i32
    return %arg0, %c0_i32 : i32, i32
  }
  func.func @transform_1(%arg0: i32) -> (i32, i32) {
    %c0_i32 = arith.constant 0 : i32
    %c0_i32_0 = arith.constant 0 : i32
    return %arg0, %c0_i32 : i32, i32
  }
  func.func @transform_2(%arg0: i32) -> (i32, i32) {
    %c0_i32 = arith.constant 0 : i32
    %c0_i32_0 = arith.constant 0 : i32
    %c0_i32_1 = arith.constant 0 : i32
    return %c0_i32, %c0_i32_0 : i32, i32
  }
  func.func @transform_3(%arg0: i32) -> (i32, i32) {
    %c0_i32 = arith.constant 0 : i32
    %c0_i32_0 = arith.constant 0 : i32
    %c0_i32_1 = arith.constant 0 : i32
    return %c0_i32, %c0_i32_0 : i32, i32
  }
  func.func @transform_4(%arg0: i32) -> (i32, i32) {
    %c0_i32 = arith.constant 0 : i32
    %c0_i32_0 = arith.constant 0 : i32
    %c0_i32_1 = arith.constant 0 : i32
    return %c0_i32, %c0_i32_0 : i32, i32
  }
  func.func @transform_5(%arg0: i32) -> (i32, i32) {
    %c0_i32 = arith.constant 0 : i32
    %c0_i32_0 = arith.constant 0 : i32
    %c0_i32_1 = arith.constant 0 : i32
    return %c0_i32, %c0_i32_0 : i32, i32
  }
  func.func @transform_6(%arg0: i32) -> (i32, i32) {
    %c0_i32 = arith.constant 0 : i32
    %c0_i32_0 = arith.constant 0 : i32
    %c0_i32_1 = arith.constant 0 : i32
    return %c0_i32, %c0_i32_0 : i32, i32
  }
  func.func @transform_7(%arg0: i32) -> (i32, i32) {
    %c0_i32 = arith.constant 0 : i32
    %c0_i32_0 = arith.constant 0 : i32
    %c0_i32_1 = arith.constant 0 : i32
    return %c0_i32, %c0_i32_0 : i32, i32
  }
  func.func @transform_8(%arg0: i32) -> (i32, i32) {
    %c0_i32 = arith.constant 0 : i32
    %c0_i32_0 = arith.constant 0 : i32
    %c0_i32_1 = arith.constant 0 : i32
    return %c0_i32, %c0_i32_0 : i32, i32
  }
  func.func @transform_9(%arg0: i32) -> (i32, i32) {
    %c0_i32 = arith.constant 0 : i32
    %c0_i32_0 = arith.constant 0 : i32
    %c0_i32_1 = arith.constant 0 : i32
    return %c0_i32, %c0_i32_0 : i32, i32
  }
  func.func @transform_10(%arg0: i32) -> (i32, i32) {
    %c0_i32 = arith.constant 0 : i32
    %c0_i32_0 = arith.constant 0 : i32
    %c0_i32_1 = arith.constant 0 : i32
    return %c0_i32, %c0_i32_0 : i32, i32
  }
  func.func @transform_11(%arg0: i32) -> (i32, i32) {
    %c0_i32 = arith.constant 0 : i32
    %c0_i32_0 = arith.constant 0 : i32
    %c0_i32_1 = arith.constant 0 : i32
    return %c0_i32, %c0_i32_0 : i32, i32
  }
  func.func @transform_12(%arg0: i32) -> (i32, i32) {
    %c0_i32 = arith.constant 0 : i32
    %c0_i32_0 = arith.constant 0 : i32
    return %arg0, %c0_i32 : i32, i32
  }
}

module attributes {stable_mosaic.version = 11 : i64} {
  func.func @_linear_kernel(%arg0: i32, %arg1: i32, %arg2: memref<16x32xf32, #tpu.memory_space<vmem>>, %arg3: memref<32x16xbf16, #tpu.memory_space<vmem>>, %arg4: memref<1x16xf32, #tpu.memory_space<vmem>>, %arg5: memref<16x16xf32, #tpu.memory_space<vmem>>) attributes {dimension_semantics = [#tpu.dimension_semantics<parallel>, #tpu.dimension_semantics<parallel>], iteration_bounds = array<i64: 1, 1>, scalar_prefetch = 0 : i64, scratch_operands = 0 : i64, tpu.core_type = #tpu.core_type<tc>, window_params = [{transform_indices = @transform_0, window_bounds = array<i64: 16, 32>}, {transform_indices = @transform_1, window_bounds = array<i64: 32, 16>}, {transform_indices = @transform_2, window_bounds = array<i64: 1, 16>}, {transform_indices = @transform_3, window_bounds = array<i64: 16, 16>}]} {
    %c0 = arith.constant 0 : index
    %c0_0 = arith.constant 0 : index
    %0 = vector.load %arg2[%c0, %c0_0] : memref<16x32xf32, #tpu.memory_space<vmem>>, vector<16x32xf32>
    %1 = arith.truncf %0 : vector<16x32xf32> to vector<16x32xbf16>
    %c0_1 = arith.constant 0 : index
    %c0_2 = arith.constant 0 : index
    %2 = vector.load %arg3[%c0_1, %c0_2] : memref<32x16xbf16, #tpu.memory_space<vmem>>, vector<32x16xbf16>
    %cst = arith.constant dense<0.000000e+00> : vector<16x16xf32>
    %3 = tpu.matmul %1, %2, %cst {dimension_numbers = #tpu.dot_dimension_numbers<[1], [0], [0], [1], [0, 0, 1, 1], [], []>} : vector<16x32xbf16>, vector<32x16xbf16>, vector<16x16xf32> -> vector<16x16xf32>
    %c0_3 = arith.constant 0 : index
    %c0_4 = arith.constant 0 : index
    %4 = vector.load %arg4[%c0_3, %c0_4] : memref<1x16xf32, #tpu.memory_space<vmem>>, vector<1x16xf32>
    %5 = vector.broadcast %4 : vector<1x16xf32> to vector<16x16xf32>
    %6 = arith.addf %3, %5 : vector<16x16xf32>
    %c0_5 = arith.constant 0 : index
    %c0_6 = arith.constant 0 : index
    %7 = vector.load %arg5[%c0_5, %c0_6] : memref<16x16xf32, #tpu.memory_space<vmem>>, vector<16x16xf32>
    tpu.vector_store %arg5[%c0_5, %c0_6], %6 {strides = array<i32>} : memref<16x16xf32, #tpu.memory_space<vmem>>, vector<16x16xf32>,
    return
  }
  func.func @transform_0(%arg0: i32, %arg1: i32) -> (i32, i32) {
    %c0_i32 = arith.constant 0 : i32
    %c0_i32_0 = arith.constant 0 : i32
    return %arg0, %c0_i32 : i32, i32
  }
  func.func @transform_1(%arg0: i32, %arg1: i32) -> (i32, i32) {
    %c0_i32 = arith.constant 0 : i32
    %c0_i32_0 = arith.constant 0 : i32
    return %c0_i32, %arg1 : i32, i32
  }
  func.func @transform_2(%arg0: i32, %arg1: i32) -> (i32, i32) {
    %c0_i32 = arith.constant 0 : i32
    %c0_i32_0 = arith.constant 0 : i32
    return %c0_i32, %arg1 : i32, i32
  }
  func.func @transform_3(%arg0: i32, %arg1: i32) -> (i32, i32) {
    %c0_i32 = arith.constant 0 : i32
    return %arg0, %arg1 : i32, i32
  }
}

</mosaic_0001>

<bundles_post_ra>
// kernel: decoder_forward.16
= control target key start
LH: loop header
LB: loop body
LE: loop exit
PB: predicated region body
PF: predicated region fallthrough
CT: control target
= control target key end

     0   :  { %v139_v0 = vmov 0.0   ;;  %vm140_vm0 = vmmov 0   ;;  %vm43_vm1 = vcmask 261120   ;;  %vm96_vm2 = vcmask 257024   ;;  %s194_s1 = inlined_call_operand.vmem [shape: bf16[32,64], index: 1, kind: input, shape index: {}]   ;;  %s195_s0 = inlined_call_operand.vmem [shape: f32[16,32], index: 0, kind: input, shape index: {}]   ;;  %s196_s2 = inlined_call_operand.vmem [shape: f32[1,64], index: 2, kind: input, shape index: {}]   ;;  %s197_s3 = inlined_call_operand.vmem [shape: bf16[16,32], index: 3, kind: output, shape index: {0}]   ;;  %s198_s4 = inlined_call_operand.vmem [shape: bf16[16,32], index: 4, kind: output, shape index: {1}]  }
   0x1   :  { %126 = vmatprep.subr.bf16.mxu0 %v139_v0  ;;  %v137_v1 = vld [vmem:[%s194_s1] sm:$0xff]   ;;  %130 = vmatprep.mubr.msk.bf16.mxu0 %vm140_vm0, %v139_v0  ;;  %v138_v2 = vld [vmem:[%s194_s1 + $0x8] sm:$0xff]  }
   0x2   :  { %127 = vmatpush3.bf16.msra.mxu0 %v137_v1  ;;  %v17_v3 = vld [vmem:[%s195_s0] sm:$0xff]  ;;  %v18_v4 = vld [vmem:[%s195_s0 + $0x8] sm:$0xff]  ;;  %s141_s0 = smov 96  }
   0x3   :  { %128 = vmatprep.subr.bf16.mxu0 %v139_v0  ;;  %v19_v5 = vpack.c.bf16 %v18_v4, %v17_v3  ;;  %v115_v6 = vld [vmem:[%s196_s2] ss:$0 sm:$0xff] }
   0x6   :  { %129 = vmatpush3.bf16.msra.mxu0 %v138_v2 }
   0x9   :  { %131 = vmatmul.mubr.msk.bf16.vlgmr.msra.gmra.mrb[0].mxu0 %vm43_vm1, %v19_v5 }
  0xdc   :  { %v81_v7 = vpop.f32.mrb[0].mxu0 }
  0xdd   :  { %v82_v8 = vadd.f32 %v115_v6, %v81_v7  ;;  %v132_v9 = vpop.f32.mrb[1].mxu0 }
  0xde   :  { %v84_v10 = vpop.f32.mrb[2].mxu0 }
  0xdf   :  { %v121_v11 = vpack.c.bf16 %v82_v8, %v82_v8  ;;  %v85_v12 = vadd.f32 %v115_v6, %v84_v10  ;;  %v133_v13 = vpop.f32.mrb[3].mxu0 }
  0xe1   :  { %97 = vst.msk [vmem:[%s197_s3] sm:$0xf] %vm96_vm2, %v121_v11  ;;  %v122_v14 = vpack.c.bf16 %v85_v12, %v85_v12  ;;  %99 = vrot.lane.b32.xlu0 %v121_v11, %s141_s0 }
  0xe3   :  { %98 = vst.msk [vmem:[%s197_s3 + $0x4] sm:$0xf] %vm96_vm2, %v122_v14 }
  0xe5   :  { %101 = vrot.lane.b32.xlu0 %v122_v14, %s141_s0 }
 0x153   :  { %v100_v15 = vpop.permute.xlu0 %99 }
 0x154   :  { %105 = vst.msk [vmem:[%s198_s4] sm:$0xf] %vm96_vm2, %v100_v15 }
 0x157   :  { %v102_v16 = vpop.permute.xlu0 %101 }
 0x158   :  { %106 = vst.msk [vmem:[%s198_s4 + $0x4] sm:$0xf] %vm96_vm2, %v102_v16 }

// kernel: decoder_forward.13
= control target key start
LH: loop header
LB: loop body
LE: loop exit
PB: predicated region body
PF: predicated region fallthrough
CT: control target
= control target key end

     0   :  { %v153_v0 = vmov 0.0   ;;  %vm154_vm0 = vmmov 0   ;;  %vm44_vm1 = vcmask 261120   ;;  %vm97_vm2 = vcmask 257024   ;;  %s155_s28 = smov 64   ;;  %s156_s29 = smov 96   ;;  %s226_s1 = inlined_call_operand.vmem [shape: bf16[32,96], index: 1, kind: input, shape index: {}]   ;;  %s227_s0 = inlined_call_operand.vmem [shape: f32[16,32], index: 0, kind: input, shape index: {}]   ;;  %s228_s2 = inlined_call_operand.vmem [shape: f32[1,96], index: 2, kind: input, shape index: {}]   ;;  %s229_s3 = inlined_call_operand.vmem [shape: bf16[16,32], index: 3, kind: output, shape index: {0}]   ;;  %s230_s5 = inlined_call_operand.vmem [shape: bf16[16,32], index: 5, kind: output, shape index: {2}]   ;;  %s231_s4 = inlined_call_operand.vmem [shape: bf16[16,32], index: 4, kind: output, shape index: {1}]  }
   0x1   :  { %139 = vmatprep.subr.bf16.mxu0 %v153_v0  ;;  %v151_v1 = vld [vmem:[%s226_s1] sm:$0xff]   ;;  %143 = vmatprep.mubr.msk.bf16.mxu0 %vm154_vm0, %v153_v0  ;;  %v152_v2 = vld [vmem:[%s226_s1 + $0x8] sm:$0xff]  }
   0x2   :  { %140 = vmatpush3.bf16.msra.mxu0 %v151_v1  ;;  %v18_v3 = vld [vmem:[%s227_s0] sm:$0xff]  ;;  %v19_v4 = vld [vmem:[%s227_s0 + $0x8] sm:$0xff] }
   0x3   :  { %141 = vmatprep.subr.bf16.mxu0 %v153_v0  ;;  %v20_v5 = vpack.c.bf16 %v19_v4, %v18_v3  ;;  %v128_v6 = vld [vmem:[%s228_s2] ss:$0 sm:$0xff] }
   0x6   :  { %142 = vmatpush3.bf16.msra.mxu0 %v152_v2 }
   0x9   :  { %144 = vmatmul.mubr.msk.bf16.vlgmr.msra.gmra.mrb[0].mxu0 %vm44_vm1, %v20_v5 }
  0xdc   :  { %v82_v7 = vpop.f32.mrb[0].mxu0 }
  0xdd   :  { %v83_v8 = vadd.f32 %v128_v6, %v82_v7  ;;  %v145_v9 = vpop.f32.mrb[1].mxu0 }
  0xde   :  { %v85_v10 = vpop.f32.mrb[2].mxu0 }
  0xdf   :  { %v134_v11 = vpack.c.bf16 %v83_v8, %v83_v8  ;;  %v86_v12 = vadd.f32 %v128_v6, %v85_v10  ;;  %v146_v13 = vpop.f32.mrb[3].mxu0 }
  0xe1   :  { %98 = vst.msk [vmem:[%s229_s3] sm:$0xf] %vm97_vm2, %v134_v11  ;;  %v135_v14 = vpack.c.bf16 %v86_v12, %v86_v12  ;;  %108 = vrot.lane.b32.xlu1 %v134_v11, %s155_s28  ;;  %100 = vrot.lane.b32.xlu0 %v134_v11, %s156_s29 }
  0xe3   :  { %99 = vst.msk [vmem:[%s229_s3 + $0x4] sm:$0xf] %vm97_vm2, %v135_v14 }
  0xe5   :  { %110 = vrot.lane.b32.xlu1 %v135_v14, %s155_s28  ;;  %102 = vrot.lane.b32.xlu0 %v135_v14, %s156_s29 }
 0x153   :  { %v109_v15 = vpop.permute.xlu1 %108  ;;  %v101_v16 = vpop.permute.xlu0 %100 }
 0x154   :  { %114 = vst.msk [vmem:[%s230_s5] sm:$0xf] %vm97_vm2, %v109_v15  ;;  %106 = vst.msk [vmem:[%s231_s4] sm:$0xf] %vm97_vm2, %v101_v16 }
 0x157   :  { %v111_v17 = vpop.permute.xlu1 %110  ;;  %v103_v18 = vpop.permute.xlu0 %102 }
 0x158   :  { %115 = vst.msk [vmem:[%s230_s5 + $0x4] sm:$0xf] %vm97_vm2, %v111_v17  ;;  %107 = vst.msk [vmem:[%s231_s4 + $0x4] sm:$0xf] %vm97_vm2, %v103_v18 }

// kernel: decoder_forward.15
= control target key start
LH: loop header
LB: loop body
LE: loop exit
PB: predicated region body
PF: predicated region fallthrough
CT: control target
= control target key end

     0   :  { %v293_v0 = vmov 0.0   ;;  %vm294_vm0 = vmmov 0   ;;  %vm62_vm1 = vcmask 261120   ;;  %vm234_vm2 = vcmask 257024   ;;  %s398_s2 = inlined_call_operand.vmem [shape: bf16[32,32], index: 2, kind: input, shape index: {}]   ;;  %s399_s0 = inlined_call_operand.vmem [shape: bf16[16,32], index: 0, kind: input, shape index: {}]   ;;  %s400_s3 = inlined_call_operand.vmem [shape: f32[1,32], index: 3, kind: input, shape index: {}]   ;;  %s401_s1 = inlined_call_operand.vmem [shape: f32[16,32], index: 1, kind: input, shape index: {}]   ;;  %s402_s6 = inlined_call_operand.vmem [shape: bf16[32,32], index: 6, kind: input, shape index: {}]   ;;  %s403_s4 = inlined_call_operand.vmem [shape: f32[1,32], index: 4, kind: input, shape index: {}]   ;;  %s404_s5 = inlined_call_operand.vmem [shape: f32[1,32], index: 5, kind: input, shape index: {}]   ;;  %s405_s8 = inlined_call_operand.vmem [shape: f32[16,32], index: 8, kind: output, shape index: {0}]   ;;  %s406_s7 = inlined_call_operand.vmem [shape: f32[1,32], index: 7, kind: input, shape index: {}]   ;;  %s407_s9 = inlined_call_operand.vmem [shape: bf16[16,32], index: 9, kind: output, shape index: {1}]  }
   0x1   :  { %266 = vmatprep.subr.bf16.mxu0 %v293_v0  ;;  %v284_v1 = vld [vmem:[%s398_s2] sm:$0xff]   ;;  %270 = vmatprep.mubr.msk.bf16.mxu0 %vm294_vm0, %v293_v0  ;;  %v285_v2 = vld [vmem:[%s398_s2 + $0x8] sm:$0xff]  }
   0x2   :  { %274 = vmatprep.subr.bf16.mxu1 %v293_v0  ;;  %278 = vmatprep.mubr.msk.bf16.mxu1 %vm294_vm0, %v293_v0  ;;  %v286_v3 = vld [vmem:[%s399_s0] sm:$0xff]   ;;  %v108_v10 = vld [vmem:[%s401_s1 + $0x8] sm:$0xff] }
   0x3   :  { %267 = vmatpush3.bf16.msra.mxu0 %v284_v1  ;;  %v245_v4 = vld [vmem:[%s400_s3] ss:$0 sm:$0xff]  ;;  %v288_v28 = vld [vmem:[%s402_s6 + $0x8] sm:$0xff]  }
   0x4   :  { %268 = vmatprep.subr.bf16.mxu0 %v293_v0  ;;  %v107_v6 = vld [vmem:[%s401_s1] sm:$0xff] }
   0x5   :  { %v287_v27 = vld [vmem:[%s402_s6] sm:$0xff]  }
   0x6   :  { %275 = vmatpush3.bf16.msra.mxu1 %v287_v27  ;;  %v250_v36 = vld [vmem:[%s403_s4] ss:$0 sm:$0xff] }
   0x7   :  { %269 = vmatpush3.bf16.msra.mxu0 %v285_v2  ;;  %276 = vmatprep.subr.bf16.mxu1 %v293_v0  ;;  %v251_v38 = vld [vmem:[%s404_s5] ss:$0 sm:$0xff] }
   0x8   :  { %v252_v46 = vld [vmem:[%s406_s7] ss:$0 sm:$0xff] }
   0xa   :  { %271 = vmatmul.mubr.msk.bf16.vlgmr.msra.gmra.mrb[0].mxu0 %vm62_vm1, %v286_v3  ;;  %277 = vmatpush3.bf16.msra.mxu1 %v288_v28 }
  0xdd   :  { %v100_v5 = vpop.f32.mrb[0].mxu0 }
  0xde   :  { %v101_v7 = vadd.f32 %v245_v4, %v100_v5  ;;  %v272_v8 = vpop.f32.mrb[1].mxu0 }
  0xdf   :  { %v103_v9 = vpop.f32.mrb[2].mxu0 }
  0xe0   :  { %v104_v11 = vadd.f32 %v245_v4, %v103_v9  ;;  %v273_v12 = vpop.f32.mrb[3].mxu0  ;;  %v109_v13 = vadd.f32 %v107_v6, %v101_v7 }
  0xe2   :  { %v113_v14 = vsel %vm62_vm1, %v109_v13, 0.0  ;;  %v110_v15 = vadd.f32 %v108_v10, %v104_v11 }
  0xe3   :  { %114 = vadd.xlane.f32.xlu0 %v113_v14 }
  0xe4   :  { %v116_v16 = vsel %vm62_vm1, %v110_v15, 0.0 }
  0xe7   :  { %117 = vadd.xlane.f32.xlu0 %v116_v16 }
 0x170   :  { %v115_v17 = vpop.xlane.xlu0 %114 }
 0x171   :  { %v120_v18 = vmul.f32 0.03125, %v115_v17 }
 0x173   :  { %v122_v19 = vsub.f32 %v109_v13, %v120_v18 }
 0x174   :  { %v118_v20 = vpop.xlane.xlu0 %117 }
 0x175   :  { %v121_v21 = vmul.f32 0.03125, %v118_v20  ;;  %v124_v22 = vmul.f32 %v122_v19, %v122_v19 }
 0x177   :  { %v123_v23 = vsub.f32 %v110_v15, %v121_v21  ;;  %v126_v24 = vsel %vm62_vm1, %v124_v22, 0.0 }
 0x178   :  { %127 = vadd.xlane.f32.xlu1 %v126_v24 }
 0x179   :  { %v125_v25 = vmul.f32 %v123_v23, %v123_v23 }
 0x17b   :  { %v129_v26 = vsel %vm62_vm1, %v125_v25, 0.0 }
 0x17c   :  { %130 = vadd.xlane.f32.xlu1 %v129_v26 }
 0x205   :  { %v128_v29 = vpop.xlane.xlu1 %127 }
 0x206   :  { %v132_v30 = vmul.f32 0.03125, %v128_v29 }
 0x208   :  { %v134_v31 = vadd.f32 1e-05, %v132_v30 }
 0x209   :  { %v131_v32 = vpop.xlane.xlu1 %130 }
 0x20a   :  { %289 = vrsqrt.f32 %v134_v31  ;;  %v133_v33 = vmul.f32 0.03125, %v131_v32 }
 0x20c   :  { %v135_v34 = vadd.f32 1e-05, %v133_v33 }
 0x20e   :  { %291 = vrsqrt.f32 %v135_v34 }
 0x214   :  { %v290_v35 = vpop.eup %289 }
 0x215   :  { %v138_v37 = vmul.f32 %v290_v35, %v122_v19 }
 0x217   :  { %v146_v39 = vmul.f32 %v250_v36, %v138_v37 }
 0x218   :  { %v292_v40 = vpop.eup %291 }
 0x219   :  { %v139_v41 = vmul.f32 %v292_v40, %v123_v23  ;;  %v154_v42 = vadd.f32 %v251_v38, %v146_v39 }
 0x21b   :  { %v147_v43 = vmul.f32 %v250_v36, %v139_v41  ;;  %156 = vst.msk [vmem:[%s405_s8] sm:$0xff] %vm62_vm1, %v154_v42 }
 0x21d   :  { %v155_v44 = vadd.f32 %v251_v38, %v147_v43 }
 0x21f   :  { %157 = vst.msk [vmem:[%s405_s8 + $0x8] sm:$0xff] %vm62_vm1, %v155_v44  ;;  %v158_v45 = vpack.c.bf16 %v155_v44, %v154_v42 }
 0x221   :  { %279 = vmatmul.mubr.msk.bf16.vlgmr.msra.gmra.mrb[0].mxu1 %vm62_vm1, %v158_v45 }
 0x2f4   :  { %v219_v47 = vpop.f32.mrb[0].mxu1 }
 0x2f5   :  { %v220_v48 = vadd.f32 %v252_v46, %v219_v47  ;;  %v280_v49 = vpop.f32.mrb[1].mxu1 }
 0x2f6   :  { %v222_v50 = vpop.f32.mrb[2].mxu1 }
 0x2f7   :  { %v258_v51 = vpack.c.bf16 %v220_v48, %v220_v48  ;;  %v223_v52 = vadd.f32 %v252_v46, %v222_v50  ;;  %v281_v53 = vpop.f32.mrb[3].mxu1 }
 0x2f9   :  { %235 = vst.msk [vmem:[%s407_s9] sm:$0xf] %vm234_vm2, %v258_v51  ;;  %v259_v54 = vpack.c.bf16 %v223_v52, %v223_v52 }
 0x2fb   :  { %236 = vst.msk [vmem:[%s407_s9 + $0x4] sm:$0xf] %vm234_vm2, %v259_v54 }

// kernel: decoder_forward.14
= control target key start
LH: loop header
LB: loop body
LE: loop exit
PB: predicated region body
PF: predicated region fallthrough
CT: control target
= control target key end

     0   :  { %11 = vsyncpa [#allocation3], 0  ;;  %s1501_s0 = inlined_call_operand.vmem [shape: bf16[2,8,32], index: 0, kind: input, shape index: {}]   ;;  %s1502_s1 = inlined_call_operand.vmem [shape: bf16[2,8,32], index: 1, kind: input, shape index: {}]   ;;  %s1503_s2 = inlined_call_operand.vmem [shape: bf16[2,8,32], index: 2, kind: input, shape index: {}]   ;;  %s1504_s3 = inlined_call_operand.vmem [shape: f32[2,8,8], index: 3, kind: input, shape index: {}]   ;;  %s1505_s4 = inlined_call_operand.vmem [shape: bf16[2,8,32], index: 4, kind: output, shape index: {0}]   ;;  %s1506_s5 = inlined_call_operand.hbm [shape: f32[2,4,8,8], index: 5, kind: output, shape index: {1}]  }
   0x1   :  { %13 = vsyncpa [#allocation3 + $0x1], 0  ;;  %s1279_s18 = smov 0   ;;  %s1281_s19 = smov 0  }
   0x2   :  { %s1283_s20 = smov 0   ;;  %s1285_s21 = smov 0  }
   0x3   :  { %s1287_s22 = smov 0   ;;  %s1289_s23 = smov 0  }
   0x4 LB: > { %s981_s24 = sadd.s32 4294967295, %s1237_s23   ;;  %s982_s25 = sadd.s32 4294967294, %s1237_s23   ;;  %s1237_s23 = sphi %s1289_s23, %s19_s23   ;;  %s1233_s22 = sphi %s1287_s22, %s1513_s22   ;;  %s1229_s21 = sphi %s1285_s21, %s1512_s21   ;;  %s1225_s20 = sphi %s1283_s20, %s1511_s20   ;;  %s1221_s19 = sphi %s1281_s19, %s1510_s19   ;;  %s1217_s18 = sphi %s1279_s18, %s1509_s18  }
   0x5   : > { %s31_s26 = sadd.s32 1, %s1233_s22  ;;  %s176_s27 = sadd.s32 1, %s1225_s20 }
   0x6   : > { %p33_p0 = scmp.ge.s32.totalorder %s31_s26, 2  ;;  %p186_p1 = scmp.ne.s32.totalorder %s1225_s20, %s1221_s19 }
   0x7   : > { %p187_p2 = scmp.eq.s32.totalorder %s981_s24, 1  ;;  %p192_p3 = scmp.ne.s32.totalorder %s1221_s19, %s1217_s18 }
   0x8   : > { %s1515_s26 = smov (%p33_p0, %s31_s26), 0  ;;  %p193_p5 = scmp.eq.s32.totalorder %s982_s25, 1 }
   0x9   : > { %p1319_p4 = por %p187_p2, %p186_p1  ;;  %s171_s29 = ssub.s32 %s1233_s22, %s1515_s26 }
   0xa   : > { %p985_p6 = scmp.ge.s32.totalorder %s1237_s23, 1  ;;  %p174_p7 = scmp.eq.s32.totalorder %s171_s29, 0 }
   0xb   : > { %p1326_p8 = por %p193_p5, %p192_p3  ;;  %p245_p9 = scmp.lt.s32.totalorder %s1237_s23, 3 }
   0xc   : > { %s1332_s6 = scalar_select %p174_p7, %s1225_s20, %s176_s27  }
   0xd   : > { %p246_p10 = pnand %p985_p6, %p245_p9 }
   0xe   : > { %p297_p11 = scmp.lt.s32.totalorder (!%p246_p10), %s1229_s21, 1  ;;  %v1239_v0 = vmov (!%p246_p10), 0.0   ;;  %vm1240_vm0 = vmmov (!%p246_p10), 0   ;;  %vm331_vm1 = vcmask (!%p246_p10), 64512   ;;  %s1241_s25 = smov (!%p246_p10), 120   ;;  %vm396_vm2 = vcmask (!%p246_p10), 1043456  }
   0xf   : > { %249 = sbr.rel (%p246_p10) target bundleno = 1491 (0x5d3), region = 36  ;;  %1028 = vmatprep.subr.bf16.mxu0 (!%p246_p10), %v1239_v0  ;;  %1030 = vmatprep.mubr.msk.bf16.mxu0 (!%p246_p10), %vm1240_vm0, %v1239_v0  ;;  %s1242_s27 = smov (!%p246_p10), 112  }
  0x10   : > { %1034 = vmatprep.subr.bf16.mxu1 (!%p246_p10), %v1239_v0  ;;  %1036 = vmatprep.mubr.msk.bf16.mxu1 (!%p246_p10), %vm1240_vm0, %v1239_v0  ;;  %s1243_s29 = smov (!%p246_p10), 104   ;;  %s1011_s16 = sshll.u32 (!%p246_p10), %s1229_s21, 9 }
  0x16   : > { %s298_s7 = scalar_select %p297_p11, %s1229_s21, 1 }
  0x17   : > { %s1246_s21 = smov [#allocation2]  }
  0x18   : > { %s1342_s8 = sshll.u32 %s298_s7, 2  ;;  %s990_s15 = sshll.u32 %s298_s7, 3 }
  0x19   : > { %s307_s11 = scalar_lea.vmem %s1502_s1, %s1342_s8  ;;  %s303_s14 = scalar_lea.vmem %s1501_s0, %s1342_s8 }
  0x1a   : > { %v328_v1 = vld [vmem:[%s307_s11] sm:$0xf]  ;;  %s318_s24 = scalar_lea.vmem %s1504_s3, %s990_s15  ;;  %s311_s10 = scalar_lea.vmem %s1503_s2, %s1342_s8 }
  0x1b   : > { %v336_v2 = vsel %vm331_vm1, %v328_v1, 0  ;;  %v327_v3 = vld [vmem:[%s303_s14] sm:$0xf]  ;;  %v995_v12 = vcombine.low %v328_v1, %v328_v1  ;;  %s294_s11 = sand.u32 1, %s1221_s19   ;;  %s1244_s14 = smov 8  }
  0x1c   : > { %1029 = vmatpush3.bf16.xpose.msra.mxu0 %v336_v2  ;;  %v1360_v5 = vld [vmem:[%s318_s24] sm:$0xff]  ;;  %v994_v13 = vcombine.low %v327_v3, %v327_v3  ;;  %s986_s12 = sshll.u32 %s294_s11, 5  ;;  %s1245_s15 = smov 16  }
  0x1d   : > { %1046 = vmatprep.subr.bf16.mxu0 %v1239_v0  ;;  %448 = vrot.lane.b32.xlu1 %v995_v12, %s1241_s25  ;;  %v1374_v19 = vld [vmem:[%s311_s10] sm:$0xf]  ;;  %s1384_s13 = scalar_lea.vmem [#allocation2], %s986_s12  ;;  %s1163_s9 = sshll.u32 %s1246_s21, 4  ;;  %s1164_s9 = int_to_ptr.vmem [resolvable:$false] %s1163_s9 }
  0x1e   : > { %v398_v20 = vsel %vm396_vm2, %v1374_v19, 0  ;;  %s836_s17 = sshll.u32 %s1384_s13, 4  ;;  %s1165_s10 = scalar_lea.vmem %s1164_s9, 1024  ;;  %s1444_s17 = int_to_ptr.vmem [resolvable:$true] %s836_s17 }
  0x1f   : > { %1035 = vmatpush3.bf16.msra.mxu1 %v398_v20  ;;  %s1159_s7 = scalar_lea.vmem %s1444_s17, 512  ;;  %p1166_p1 = scmp.lt.s32.totalorder %s1444_s17, %s1164_s9 }
  0x20   : > { %1040 = vmatprep.subr.bf16.mxu1 %v1239_v0  ;;  %p1160_p12 = scmp.ne.s32.totalorder %s1444_s17, %s1159_s7  ;;  %p1167_p2 = scmp.lt.s32.totalorder %s1165_s10, %s1159_s7 }
  0x21   : > { %443 = vrot.lane.b32.xlu1 %v994_v13, %s1241_s25 }
  0x22   : > { %p1161_p13 = pnand %p1160_p12, %p1319_p4  ;;  %p1168_p3 = por %p1167_p2, %p1166_p1 }
  0x23   : > { %1031 = vmatmul.mubr.msk.bf16.vlgmr.msra.gmra.mrb[0].mxu0 %vm331_vm1, %v327_v3 }
  0x24   : > { %1048 = vmatprep.mubr.msk.bf16.mxu0 %vm1240_vm0, %v1239_v0  ;;  %p1162_p0 = pneg %p1161_p13 }
  0x25   : > { %563 = vrot.lane.b32.xlu1 %v994_v13, %s1242_s27 }
  0x26   : > { %p1169_p5 = pnand %p1168_p3, %p1162_p0 }
  0x29   : > { %679 = vrot.lane.b32.xlu1 %v995_v12, %s1243_s29 }
  0x2d   : > { %677 = vrot.lane.b32.xlu1 %v994_v13, %s1243_s29 }
  0x8f   : > { %v449_v23 = vpop.permute.xlu1 %448 }
  0x90   : > { %v454_v25 = vsel %vm331_vm1, %v449_v23, 0 }
  0x93   : > { %v444_v27 = vpop.permute.xlu1 %443 }
  0x97   : > { %v564_v29 = vpop.permute.xlu1 %563 }
  0x9b   : > { %v680_v31 = vpop.permute.xlu1 %679 }
  0x9c   : > { %v685_v32 = vsel %vm331_vm1, %v680_v31, 0 }
  0x9f   : > { %v678_v33 = vpop.permute.xlu1 %677 }
  0xf6   : > { %v372_v4 = vpop.f32.mrb[0].mxu0 }
  0xf7   : > { %v378_v6 = vmul.f32 0.35355338, %v372_v4  ;;  %v1032_v7 = vpop.f32.mrb[1].mxu0 }
  0xf8   : > { %v375_v8 = vpop.f32.mrb[2].mxu0 }
  0xf9   : > { %v1033_v9 = vpop.f32.mrb[3].mxu0  ;;  %v379_v10 = vadd.f32 %v378_v6, %v1360_v5 }
  0xfb   : > { %v380_v11 = vsel %vm331_vm1, %v379_v10, -inf }
  0xfc   : > { %381 = vmax.xlane.f32.xlu0 %v380_v11 }
 0x189   : > { %v382_v14 = vpop.xlane.xlu0 %381 }
 0x18a   : > { %v383_v15 = vsub.f32 %v379_v10, %v382_v14 }
 0x18c   : > { %v384_v16 = vmul.f32 1.442695, %v383_v15 }
 0x18e   : > { %1143 = vpow2.f32 %v384_v16 }
 0x198   : > { %v1144_v17 = vpop.eup %1143 }
 0x199   : > { %v386_v18 = vsel %vm331_vm1, %v1144_v17, 0.0 }
 0x19a   : > { %387 = vadd.xlane.f32.xlu0 %v386_v18 }
 0x1b0   : > { %565 = vrot.lane.b32.xlu0 %v995_v12, %s1242_s27 }
 0x227   : > { %v388_v21 = vpop.xlane.xlu0 %387 }
 0x228   : > { %1145 = vrcp.f32 %v388_v21 }
 0x22b   : > { %v566_v28 = vpop.permute.xlu0 %565 }
 0x22c   : > { %v571_v30 = vsel %vm331_vm1, %v566_v28, 0 }
 0x232   : > { %v1146_v22 = vpop.eup %1145 }
 0x233   : > { %v390_v24 = vmul.f32 %v1146_v22, %v1144_v17 }
 0x235   : > { %391 = vst.msk [vmem:[%s1384_s13] sm:$0xff] %vm331_vm1, %v390_v24  ;;  %v392_v26 = vpack.c.bf16 %v390_v24, %v390_v24 }
 0x237   : > { %1037 = vmatmul.mubr.msk.bf16.vlgmr.msra.gmra.mrb[0].mxu1 %vm331_vm1, %v392_v26 }
 0x238   : > { %1041 = vmatpush3.bf16.xpose.msra.mxu1 %v454_v25  ;;  %1042 = vmatprep.mubr.msk.bf16.mxu1 %vm1240_vm0, %v1239_v0 }
 0x239   : > { %1052 = vmatprep.subr.bf16.mxu1 %v1239_v0 }
 0x23f   : > { %1043 = vmatmul.mubr.msk.bf16.vlgmr.msra.gmra.mrb[4].mxu1 %vm331_vm1, %v444_v27 }
 0x240   : > { %1053 = vmatpush3.bf16.xpose.msra.mxu1 %v571_v30  ;;  %1054 = vmatprep.mubr.msk.bf16.mxu1 %vm1240_vm0, %v1239_v0 }
 0x241   : > { %1064 = vmatprep.subr.bf16.mxu1 %v1239_v0 }
 0x247   : > { %1055 = vmatmul.mubr.msk.bf16.vlgmr.msra.gmra.mrb[8].mxu1 %vm331_vm1, %v564_v29 }
 0x248   : > { %1065 = vmatpush3.bf16.xpose.msra.mxu1 %v685_v32  ;;  %1066 = vmatprep.mubr.msk.bf16.mxu1 %vm1240_vm0, %v1239_v0 }
 0x24f   : > { %1067 = vmatmul.mubr.msk.bf16.vlgmr.msra.gmra.mrb[12].mxu1 %vm331_vm1, %v678_v33 }
 0x30a   : > { %v1402_v34 = vpop.f32.mrb[0].mxu1 }
 0x30b   : > { %v1038_v35 = vpop.f32.mrb[1].mxu1 }
 0x30c   : > { %v437_v36 = vpop.f32.mrb[2].mxu1 }
 0x30d   : > { %v1039_v37 = vpop.f32.mrb[3].mxu1 }
 0x312   : > { %v490_v38 = vpop.f32.mrb[4].mxu1 }
 0x313   : > { %v496_v39 = vmul.f32 0.35355338, %v490_v38  ;;  %v1044_v40 = vpop.f32.mrb[5].mxu1 }
 0x314   : > { %v493_v41 = vpop.f32.mrb[6].mxu1 }
 0x315   : > { %v1045_v42 = vpop.f32.mrb[7].mxu1  ;;  %v497_v43 = vadd.f32 %v496_v39, %v1360_v5 }
 0x317   : > { %v498_v44 = vsel %vm331_vm1, %v497_v43, -inf }
 0x318   : > { %499 = vmax.xlane.f32.xlu1 %v498_v44 }
 0x31a   : > { %v607_v45 = vpop.f32.mrb[8].mxu1 }
 0x31b   : > { %v613_v46 = vmul.f32 0.35355338, %v607_v45  ;;  %v1056_v47 = vpop.f32.mrb[9].mxu1 }
 0x31c   : > { %v610_v48 = vpop.f32.mrb[10].mxu1 }
 0x31d   : > { %v614_v49 = vadd.f32 %v613_v46, %v1360_v5  ;;  %v1057_v50 = vpop.f32.mrb[11].mxu1 }
 0x31f   : > { %v615_v51 = vsel %vm331_vm1, %v614_v49, -inf }
 0x320   : > { %616 = vmax.xlane.f32.xlu0 %v615_v51 }
 0x322   : > { %v721_v52 = vpop.f32.mrb[12].mxu1 }
 0x323   : > { %v727_v53 = vmul.f32 0.35355338, %v721_v52  ;;  %v1068_v54 = vpop.f32.mrb[13].mxu1 }
 0x324   : > { %v724_v55 = vpop.f32.mrb[14].mxu1 }
 0x325   : > { %v728_v56 = vadd.f32 %v727_v53, %v1360_v5  ;;  %v1069_v57 = vpop.f32.mrb[15].mxu1  ;;  %v998_v5 = vcombine.low %v1374_v19, %v1374_v19 }
 0x327   : > { %v729_v58 = vsel %vm331_vm1, %v728_v56, -inf }
 0x328   : > { %730 = vmax.xlane.f32.xlu1 %v729_v58 }
 0x3a5   : > { %v500_v59 = vpop.xlane.xlu1 %499 }
 0x3a6   : > { %v501_v60 = vsub.f32 %v497_v43, %v500_v59 }
 0x3a8   : > { %v502_v61 = vmul.f32 1.442695, %v501_v60 }
 0x3aa   : > { %1147 = vpow2.f32 %v502_v61 }
 0x3ad   : > { %v617_v62 = vpop.xlane.xlu0 %616 }
 0x3ae   : > { %v618_v63 = vsub.f32 %v614_v49, %v617_v62 }
 0x3b0   : > { %v619_v1 = vmul.f32 1.442695, %v618_v63 }
 0x3b2   : > { %1149 = vpow2.f32 %v619_v1 }
 0x3b4   : > { %v1148_v2 = vpop.eup %1147 }
 0x3b5   : > { %v504_v3 = vsel %vm331_vm1, %v1148_v2, 0.0  ;;  %v731_v7 = vpop.xlane.xlu1 %730 }
 0x3b6   : > { %505 = vadd.xlane.f32.xlu1 %v504_v3  ;;  %v732_v8 = vsub.f32 %v728_v56, %v731_v7 }
 0x3b8   : > { %v733_v9 = vmul.f32 1.442695, %v732_v8 }
 0x3ba   : > { %1151 = vpow2.f32 %v733_v9 }
 0x3bc   : > { %v1150_v4 = vpop.eup %1149 }
 0x3bd   : > { %v621_v6 = vsel %vm331_vm1, %v1150_v4, 0.0 }
 0x3be   : > { %622 = vadd.xlane.f32.xlu0 %v621_v6 }
 0x3c4   : > { %v1152_v10 = vpop.eup %1151 }
 0x3c5   : > { %v735_v11 = vsel %vm331_vm1, %v1152_v10, 0.0 }
 0x3c7   : > { %629 = vrot.lane.b32.xlu1 %v998_v5, %s1242_s27  ;;  %s1442_s27 = scalar_lea.hbm %s1506_s5, %s1011_s16 }
 0x3d4   : > { %515 = vrot.lane.b32.xlu0 %v998_v5, %s1241_s25 }
 0x3eb   : > { %736 = vadd.xlane.f32.xlu1 %v735_v11 }
 0x3fc   : > { %743 = vrot.lane.b32.xlu1 %v998_v5, %s1243_s29  ;;  %s1448_s29 = scalar_lea.sflag [#allocation3], %s294_s11 }
 0x443   : > { %v506_v12 = vpop.xlane.xlu1 %505 }
 0x444   : > { %1153 = vrcp.f32 %v506_v12 }
 0x447   : > { %v630_v18 = vpop.permute.xlu1 %629 }
 0x448   : > { %v635_v20 = vsel %vm396_vm2, %v630_v18, 0 }
 0x44b   : > { %v623_v13 = vpop.xlane.xlu0 %622 }
 0x44c   : > { %1155 = vrcp.f32 %v623_v13 }
 0x44e   : > { %v1154_v14 = vpop.eup %1153 }
 0x44f   : > { %v508_v15 = vmul.f32 %v1154_v14, %v1148_v2  ;;  %v516_v16 = vpop.permute.xlu0 %515 }
 0x450   : > { %v521_v17 = vsel %vm396_vm2, %v516_v16, 0 }
 0x451   : > { %997 = vst.msk [vmem:[%s1384_s13 + $0x8] sm:$0xff] %vm331_vm1, %v508_v15  ;;  %1047 = vmatpush3.bf16.msra.mxu0 %v521_v17  ;;  %v511_v19 = vpack.c.bf16 %v508_v15, %v508_v15 }
 0x452   : > { %1058 = vmatprep.subr.bf16.mxu0 %v1239_v0 }
 0x454   : > { %1049 = vmatmul.mubr.msk.bf16.vlgmr.msra.gmra.mrb[4].mxu0 %vm331_vm1, %v511_v19 }
 0x455   : > { %1059 = vmatpush3.bf16.msra.mxu0 %v635_v20  ;;  %1060 = vmatprep.mubr.msk.bf16.mxu0 %vm1240_vm0, %v1239_v0 }
 0x456   : > { %v1156_v21 = vpop.eup %1155  ;;  %1070 = vmatprep.subr.bf16.mxu0 %v1239_v0 }
 0x457   : > { %v625_v22 = vmul.f32 %v1156_v21, %v1150_v4 }
 0x459   : > { %1001 = vst.msk [vmem:[%s1384_s13 + $0x10] sm:$0xff] %vm331_vm1, %v625_v22  ;;  %v628_v23 = vpack.c.bf16 %v625_v22, %v625_v22 }
 0x45c   : > { %1061 = vmatmul.mubr.msk.bf16.vlgmr.msra.gmra.mrb[8].mxu0 %vm331_vm1, %v628_v23 }
 0x45d   : > { %1072 = vmatprep.mubr.msk.bf16.mxu0 %vm1240_vm0, %v1239_v0 }
 0x478   : > { %v737_v24 = vpop.xlane.xlu1 %736 }
 0x479   : > { %1157 = vrcp.f32 %v737_v24 }
 0x47c   : > { %v744_v25 = vpop.permute.xlu1 %743 }
 0x47d   : > { %v749_v26 = vsel %vm396_vm2, %v744_v25, 0 }
 0x47e   : > { %1071 = vmatpush3.bf16.msra.mxu0 %v749_v26 }
 0x483   : > { %v1158_v27 = vpop.eup %1157 }
 0x484   : > { %v739_v28 = vmul.f32 %v1158_v27, %v1152_v10 }
 0x486   : > { %1004 = vst.msk [vmem:[%s1384_s13 + $0x18] sm:$0xff] %vm331_vm1, %v739_v28  ;;  %v742_v29 = vpack.c.bf16 %v739_v28, %v739_v28 }
 0x488   : > { %1073 = vmatmul.mubr.msk.bf16.vlgmr.msra.gmra.mrb[12].mxu0 %vm331_vm1, %v742_v29 }
 0x527   : > { %v557_v30 = vpop.f32.mrb[4].mxu0 }
 0x528   : > { %792 = vrot.lane.b32.xlu0 %v557_v30, %s1244_s14  ;;  %v1050_v0 = vpop.f32.mrb[5].mxu0 }
 0x529   : > { %v560_v31 = vpop.f32.mrb[6].mxu0 }
 0x52a   : > { %v1051_v32 = vpop.f32.mrb[7].mxu0 }
 0x52f   : > { %v671_v33 = vpop.f32.mrb[8].mxu0 }
 0x530   : > { %796 = vrot.lane.b32.xlu1 %v671_v33, %s1245_s15  ;;  %v1062_v35 = vpop.f32.mrb[9].mxu0 }
 0x531   : > { %v674_v36 = vpop.f32.mrb[10].mxu0 }
 0x532   : > { %v1063_v37 = vpop.f32.mrb[11].mxu0 }
 0x533   : > { %1172 = shalt.err (!%p1169_p5)
}
 0x534   : > { %s1173_s11 = scalar_lea.hbm %s1442_s27, 512  ;;  %s1177_s15 = scalar_lea.hbm %s1506_s5, 1024 }
 0x535   : > { %p1174_p6 = scmp.ne.s32.totalorder %s1442_s27, %s1173_s11  ;;  %p1178_p10 = scmp.lt.u32.totalorder %s1442_s27, %s1506_s5 }
 0x536   : > { %p1179_p11 = scmp.lt.u32.totalorder %s1177_s15, %s1173_s11  ;;  %p1181_p13 = scmp.lt.u32.totalorder %s1173_s11, %s1442_s27 }
 0x537   : > { %p1175_p7 = pnand %p1174_p6, %p1319_p4 }
 0x538   : > { %p1180_p12 = por %p1179_p11, %p1178_p10 }
 0x539   : > { %p1176_p9 = pneg %p1175_p7 }
 0x53a   : > { %p1182_p0 = por %p1181_p13, %p1180_p12 }
 0x53c   : > { %p1183_p1 = pnand %p1182_p0, %p1176_p9 }
 0x53e   : > { %1186 = shalt.err (!%p1183_p1)
}
 0x53f   : > { %s1247_s25 = smov 128   ;;  %s1248_s7 = smov 24   ;;  %vm804_vm3 = vcmask 130048   ;;  %vm806_vm4 = vcmask 195584   ;;  %vm809_vm5 = vcmask 257024  }
 0x540   : > { %1076 = dma.vmem_to_hbm [thread:$0]  (%p1319_p4), %s1444_s17, 512, %s1442_s27, %s1448_s29, %s1247_s25, %s1247_s25, %s1244_s14  }
 0x541   : > { %s325_s9 = scalar_lea.vmem %s1505_s4, %s1342_s8 }
 0x55b   : > { %v785_v38 = vpop.f32.mrb[12].mxu0 }
 0x55c   : > { %800 = vrot.lane.b32.xlu0 %v785_v38, %s1248_s7  ;;  %v1074_v39 = vpop.f32.mrb[13].mxu0 }
 0x55d   : > { %v788_v40 = vpop.f32.mrb[14].mxu0 }
 0x55e   : > { %v1075_v41 = vpop.f32.mrb[15].mxu0 }
 0x59a   : > { %v793_v42 = vpop.permute.xlu0 %792 }
 0x59b   : > { %v803_v44 = vsel %vm331_vm1, %v1402_v34, %v793_v42 }
 0x5a2   : > { %v797_v43 = vpop.permute.xlu1 %796 }
 0x5a3   : > { %v805_v45 = vsel %vm804_vm3, %v803_v44, %v797_v43 }
 0x5ce   : > { %v801_v46 = vpop.permute.xlu0 %800 }
 0x5cf   : > { %v807_v47 = vsel %vm806_vm4, %v805_v45, %v801_v46 }
 0x5d0   : > { %v808_v48 = vpack.c.bf16 %v807_v47, %v807_v47 }
 0x5d2   : > { %810 = vst.msk [vmem:[%s325_s9] sm:$0xf] %vm809_vm5, %v808_v48 }
 0x5d3 PF: > { %p1082_p4 = scmp.ge.s32.totalorder %s1237_s23, 2  ;;  %s861_s14 = sand.u32 1, %s1217_s18  }
 0x5d4   : > { %s862_s17 = scalar_lea.sflag [#allocation3], %s861_s14 }
 0x5d5   : > { %p1079_p2 = pnand %p1082_p4, %p1326_p8 }
 0x5d7   : > { %1212 = dma.done.wait (!%p1079_p2), %s862_s17, 512  }
 0x5d8   : > { %1214 = vsyncadd (!%p1079_p2), %s862_s17, 4294966784  ;;  %s19_s23 = sadd.s32 1, %s1237_s23   ;;  %s1509_s18 = smov %s1221_s19 }
 0x5d9   : > { %p16_p3 = scmp.ge.s32.totalorder %s19_s23, 4   ;;  %s1510_s19 = smov %s1225_s20 }
 0x5da   : > { %s1511_s20 = smov %s1332_s6  ;;  %s1512_s21 = smov %s1233_s22 }
 0x5db   : > { %s1513_s22 = smov %s1515_s26  ;;  %18 = sbr.rel (!%p16_p3) target bundleno = 4 (0x4), region = 95 }
 0x5e2   :  { %867 = vsyncpa [#allocation3], 1 }
 0x5e3   :  { %869 = vsyncpa [#allocation3 + $0x1], 1 }

// kernel: decoder_forward.25
= control target key start
LH: loop header
LB: loop body
LE: loop exit
PB: predicated region body
PF: predicated region fallthrough
CT: control target
= control target key end

     0   :  { %v152_v1 = vmov 0.0   ;;  %vm153_vm0 = vmmov 0   ;;  %s204_s0 = inlined_call_operand.vmem [shape: f32[16,32], index: 0, kind: input, shape index: {}]   ;;  %s205_s1 = inlined_call_operand.vmem [shape: bf16[32,16], index: 1, kind: input, shape index: {}]   ;;  %s206_s2 = inlined_call_operand.vmem [shape: f32[1,16], index: 2, kind: input, shape index: {}]   ;;  %s207_s3 = inlined_call_operand.hbm [shape: f32[16,16], index: 3, kind: output, shape index: {}]  }
   0x1   :  { %v126_v0 = vld [vmem:[%s205_s1] sm:$0xff]   ;;  %113 = vmatprep.subr.bf16.mxu0 %v152_v1  ;;  %v127_v2 = vld [vmem:[%s205_s1 + $0x8] sm:$0xff]   ;;  %117 = vmatprep.mubr.msk.bf16.mxu0 %vm153_vm0, %v152_v1 }
   0x2   :  { %114 = vmatpush3.bf16.msra.mxu0 %v126_v0  ;;  %v16_v3 = vld [vmem:[%s204_s0] sm:$0xff]  ;;  %v17_v4 = vld [vmem:[%s204_s0 + $0x8] sm:$0xff] }
   0x3   :  { %115 = vmatprep.subr.bf16.mxu0 %v152_v1 }
   0x4   :  { %8 = vsyncpa [#allocation3], 0  ;;  %v18_v5 = vpack.c.bf16 %v17_v4, %v16_v3  ;;  %vm42_vm1 = vcmask 261120   ;;  %v106_v6 = vld [vmem:[%s206_s2] ss:$0 sm:$0xff]  ;;  %s154_s1 = smov [#allocation2]  }
   0x5   :  { %s95_s22 = sshll.u32 %s154_s1, 4  ;;  %vm87_vm2 = vcmask 130048   ;;  %s96_s22 = int_to_ptr.vmem [resolvable:$true] %s95_s22 }
   0x6   :  { %116 = vmatpush3.bf16.msra.mxu0 %v127_v2  ;;  %s128_s0 = scalar_lea.vmem %s96_s22, 256  ;;  %p133_p1 = scmp.lt.s32.totalorder %s96_s22, %s96_s22 }
   0x7   :  { %p129_p0 = scmp.ne.s32.totalorder %s96_s22, %s128_s0  ;;  %p134_p2 = scmp.lt.s32.totalorder %s128_s0, %s128_s0 }
   0x9   :  { %118 = vmatmul.mubr.msk.bf16.vlgmr.msra.gmra.mrb[0].mxu0 %vm42_vm1, %v18_v5  ;;  %p135_p3 = por %p134_p2, %p133_p1 }
   0xb   :  { %p136_p4 = pnand %p135_p3, %p129_p0 }
  0xdc   :  { %v80_v7 = vpop.f32.mrb[0].mxu0 }
  0xdd   :  { %v81_v8 = vadd.f32 %v106_v6, %v80_v7  ;;  %v119_v9 = vpop.f32.mrb[1].mxu0 }
  0xde   :  { %v83_v10 = vpop.f32.mrb[2].mxu0 }
  0xdf   :  { %88 = vst.msk [vmem:[#allocation2] sm:$0xff] %vm87_vm2, %v81_v8  ;;  %v84_v11 = vadd.f32 %v106_v6, %v83_v10  ;;  %v120_v12 = vpop.f32.mrb[3].mxu0 }
  0xe1   :  { %89 = vst.msk [vmem:[#allocation2 + $0x8] sm:$0xff] %vm87_vm2, %v84_v11 }
  0xe2   :  { %139 = shalt.err (!%p136_p4)
}
  0xe3   :  { %s140_s24 = scalar_lea.hbm %s207_s3, 256 }
  0xe4   :  { %p141_p5 = scmp.ne.s32.totalorder %s207_s3, %s140_s24  ;;  %p144_p6 = scmp.lt.u32.totalorder %s140_s24, %s207_s3 }
  0xe6   :  { %p146_p7 = pnand %p144_p6, %p141_p5 }
  0xe8   :  { %149 = shalt.err (!%p146_p7)
}
  0xe9   :  { %s155_s29 = smov 128   ;;  %s156_s30 = smov 8  }
  0xea   :  { %101 = dma.vmem_to_hbm [thread:$0]  %s96_s22, 256, %s207_s3, [#allocation3], %s155_s29, %s155_s29, %s156_s30  }
  0xeb   :  { %150 = dma.done.wait [#allocation3], 256  }
  0xec   :  { %151 = vsyncadd [#allocation3], 4294967040 }
  0xed   :  { %105 = vsyncpa [#allocation3], 1 }

// kernel: decoder_forward.18
= control target key start
LH: loop header
LB: loop body
LE: loop exit
PB: predicated region body
PF: predicated region fallthrough
CT: control target
= control target key end

     0   :  { %v450_v0 = vmov 0.0   ;;  %vm451_vm0 = vmmov 0   ;;  %vm72_vm1 = vcmask 261120   ;;  %vm276_vm2 = vcmask 523264   ;;  %s600_s2 = inlined_call_operand.vmem [shape: bf16[32,32], index: 2, kind: input, shape index: {}]   ;;  %s601_s0 = inlined_call_operand.vmem [shape: bf16[16,32], index: 0, kind: input, shape index: {}]   ;;  %s602_s3 = inlined_call_operand.vmem [shape: f32[1,32], index: 3, kind: input, shape index: {}]   ;;  %s603_s1 = inlined_call_operand.vmem [shape: f32[16,32], index: 1, kind: input, shape index: {}]   ;;  %s604_s6 = inlined_call_operand.vmem [shape: bf16[32,64], index: 6, kind: input, shape index: {}]   ;;  %s605_s8 = inlined_call_operand.vmem [shape: bf16[64,32], index: 8, kind: input, shape index: {}]   ;;  %s606_s4 = inlined_call_operand.vmem [shape: f32[1,32], index: 4, kind: input, shape index: {}]   ;;  %s607_s5 = inlined_call_operand.vmem [shape: f32[1,32], index: 5, kind: input, shape index: {}]   ;;  %s608_s7 = inlined_call_operand.vmem [shape: f32[1,64], index: 7, kind: input, shape index: {}]   ;;  %s609_s9 = inlined_call_operand.vmem [shape: f32[1,32], index: 9, kind: input, shape index: {}]   ;;  %s610_s10 = inlined_call_operand.vmem [shape: f32[1,32], index: 10, kind: input, shape index: {}]   ;;  %s611_s11 = inlined_call_operand.vmem [shape: f32[1,32], index: 11, kind: input, shape index: {}]   ;;  %s612_s12 = inlined_call_operand.vmem [shape: f32[16,32], index: 12, kind: output, shape index: {}]  }
   0x1   :  { %403 = vmatprep.subr.bf16.mxu1 %v450_v0  ;;  %v433_v1 = vld [vmem:[%s600_s2] sm:$0xff]   ;;  %407 = vmatprep.mubr.msk.bf16.mxu1 %vm451_vm0, %v450_v0  ;;  %v434_v2 = vld [vmem:[%s600_s2 + $0x8] sm:$0xff]   ;;  %v440_v48 = vld [vmem:[%s605_s8 + $0x10] sm:$0xff]  }
   0x2   :  { %419 = vmatprep.subr.bf16.mxu0 %v450_v0  ;;  %427 = vmatprep.mubr.msk.bf16.mxu0 %vm451_vm0, %v450_v0  ;;  %v435_v3 = vld [vmem:[%s601_s0] sm:$0xff]   ;;  %v118_v10 = vld [vmem:[%s603_s1 + $0x8] sm:$0xff]  ;;  %v441_v49 = vld [vmem:[%s605_s8 + $0x18] sm:$0xff]  }
   0x3   :  { %404 = vmatpush3.bf16.msra.mxu1 %v433_v1  ;;  %v373_v4 = vld [vmem:[%s602_s3] ss:$0 sm:$0xff]  ;;  %v437_v28 = vld [vmem:[%s604_s6 + $0x8] sm:$0xff]  }
   0x4   :  { %405 = vmatprep.subr.bf16.mxu1 %v450_v0  ;;  %v117_v6 = vld [vmem:[%s603_s1] sm:$0xff]  ;;  %v439_v30 = vld [vmem:[%s605_s8 + $0x8] sm:$0xff]  }
   0x5   :  { %v436_v27 = vld [vmem:[%s604_s6] sm:$0xff]  }
   0x6   :  { %v438_v29 = vld [vmem:[%s605_s8] sm:$0xff]  }
   0x7   :  { %406 = vmatpush3.bf16.msra.mxu1 %v434_v2  ;;  %420 = vmatpush3.bf16.msra.mxu0 %v438_v29  ;;  %v378_v39 = vld [vmem:[%s606_s4] ss:$0 sm:$0xff] }
   0x8   :  { %411 = vmatprep.subr.bf16.mxu1 %v450_v0  ;;  %421 = vmatprep.subr.bf16.mxu0 %v450_v0  ;;  %v379_v43 = vld [vmem:[%s607_s5] ss:$0 sm:$0xff] }
   0x9   :  { %v380_v50 = vld [vmem:[%s608_s7] ss:$0 sm:$0xff] }
   0xa   :  { %408 = vmatmul.mubr.msk.bf16.vlgmr.msra.gmra.mrb[0].mxu1 %vm72_vm1, %v435_v3  ;;  %v384_v60 = vld [vmem:[%s609_s9] ss:$0 sm:$0xff] }
   0xb   :  { %415 = vmatprep.mubr.msk.bf16.mxu1 %vm451_vm0, %v450_v0  ;;  %412 = vmatpush3.bf16.msra.mxu1 %v436_v27  ;;  %v391_v27 = vld [vmem:[%s611_s11] ss:$0 sm:$0xff] }
   0xc   :  { %413 = vmatprep.subr.bf16.mxu1 %v450_v0  ;;  %422 = vmatpush3.bf16.msra.mxu0 %v439_v30 }
   0xd   :  { %423 = vmatprep.subr.bf16.mxu0 %v450_v0 }
   0xf   :  { %414 = vmatpush3.bf16.msra.mxu1 %v437_v28 }
  0x10   :  { %424 = vmatpush3.bf16.msra.mxu0 %v440_v48 }
  0x11   :  { %425 = vmatprep.subr.bf16.mxu0 %v450_v0 }
  0x14   :  { %426 = vmatpush3.bf16.msra.mxu0 %v441_v49 }
  0xdd   :  { %v110_v5 = vpop.f32.mrb[0].mxu1 }
  0xde   :  { %v111_v7 = vadd.f32 %v373_v4, %v110_v5  ;;  %v409_v8 = vpop.f32.mrb[1].mxu1 }
  0xdf   :  { %v113_v9 = vpop.f32.mrb[2].mxu1 }
  0xe0   :  { %v114_v11 = vadd.f32 %v373_v4, %v113_v9  ;;  %v410_v12 = vpop.f32.mrb[3].mxu1  ;;  %v119_v13 = vadd.f32 %v117_v6, %v111_v7 }
  0xe2   :  { %v123_v14 = vsel %vm72_vm1, %v119_v13, 0.0  ;;  %v120_v15 = vadd.f32 %v118_v10, %v114_v11 }
  0xe3   :  { %124 = vadd.xlane.f32.xlu0 %v123_v14 }
  0xe4   :  { %v126_v16 = vsel %vm72_vm1, %v120_v15, 0.0 }
  0xe7   :  { %127 = vadd.xlane.f32.xlu0 %v126_v16 }
 0x170   :  { %v125_v17 = vpop.xlane.xlu0 %124 }
 0x171   :  { %v130_v18 = vmul.f32 0.03125, %v125_v17 }
 0x173   :  { %v132_v19 = vsub.f32 %v119_v13, %v130_v18 }
 0x174   :  { %v128_v20 = vpop.xlane.xlu0 %127 }
 0x175   :  { %v131_v21 = vmul.f32 0.03125, %v128_v20  ;;  %v134_v22 = vmul.f32 %v132_v19, %v132_v19 }
 0x177   :  { %v133_v23 = vsub.f32 %v120_v15, %v131_v21  ;;  %v136_v24 = vsel %vm72_vm1, %v134_v22, 0.0 }
 0x178   :  { %137 = vadd.xlane.f32.xlu1 %v136_v24  ;;  %v390_v24 = vld [vmem:[%s610_s10] ss:$0 sm:$0xff] }
 0x179   :  { %v135_v25 = vmul.f32 %v133_v23, %v133_v23 }
 0x17b   :  { %v139_v26 = vsel %vm72_vm1, %v135_v25, 0.0 }
 0x17c   :  { %140 = vadd.xlane.f32.xlu1 %v139_v26 }
 0x205   :  { %v138_v31 = vpop.xlane.xlu1 %137 }
 0x206   :  { %v142_v32 = vmul.f32 0.03125, %v138_v31 }
 0x208   :  { %v144_v33 = vadd.f32 1e-05, %v142_v32 }
 0x209   :  { %v141_v34 = vpop.xlane.xlu1 %140 }
 0x20a   :  { %442 = vrsqrt.f32 %v144_v33  ;;  %v143_v35 = vmul.f32 0.03125, %v141_v34 }
 0x20c   :  { %v145_v36 = vadd.f32 1e-05, %v143_v35 }
 0x20e   :  { %444 = vrsqrt.f32 %v145_v36 }
 0x214   :  { %v443_v37 = vpop.eup %442 }
 0x215   :  { %v148_v38 = vmul.f32 %v443_v37, %v132_v19 }
 0x217   :  { %v156_v41 = vmul.f32 %v378_v39, %v148_v38 }
 0x218   :  { %v445_v40 = vpop.eup %444 }
 0x219   :  { %v149_v42 = vmul.f32 %v445_v40, %v133_v23  ;;  %v164_v45 = vadd.f32 %v379_v43, %v156_v41 }
 0x21b   :  { %v157_v44 = vmul.f32 %v378_v39, %v149_v42 }
 0x21d   :  { %v165_v46 = vadd.f32 %v379_v43, %v157_v44 }
 0x21f   :  { %v166_v47 = vpack.c.bf16 %v165_v46, %v164_v45 }
 0x221   :  { %416 = vmatmul.mubr.msk.bf16.vlgmr.msra.gmra.mrb[4].mxu1 %vm72_vm1, %v166_v47 }
 0x2f4   :  { %v227_v51 = vpop.f32.mrb[4].mxu1 }
 0x2f5   :  { %v228_v52 = vadd.f32 %v380_v50, %v227_v51  ;;  %v417_v53 = vpop.f32.mrb[5].mxu1 }
 0x2f6   :  { %v230_v54 = vpop.f32.mrb[6].mxu1 }
 0x2f7   :  { %v231_v55 = vadd.f32 %v380_v50, %v230_v54  ;;  %v418_v56 = vpop.f32.mrb[7].mxu1  ;;  %v234_v57 = vmax.f32 %v228_v52, 0.0 }
 0x2f9   :  { %v235_v58 = vmax.f32 %v231_v55, 0.0 }
 0x2fb   :  { %v236_v59 = vpack.c.bf16 %v235_v58, %v234_v57 }
 0x2fd   :  { %428 = vmatmul.mubr.msk.bf16.vlgmr.msra.gmra.mrb[0].mxu0 %vm276_vm2, %v236_v59 }
 0x3d0   :  { %v314_v61 = vpop.f32.mrb[0].mxu0 }
 0x3d1   :  { %v315_v62 = vadd.f32 %v384_v60, %v314_v61  ;;  %v429_v63 = vpop.f32.mrb[1].mxu0 }
 0x3d2   :  { %v317_v0 = vpop.f32.mrb[2].mxu0 }
 0x3d3   :  { %v318_v1 = vadd.f32 %v384_v60, %v317_v0  ;;  %v430_v2 = vpop.f32.mrb[3].mxu0  ;;  %v321_v3 = vadd.f32 %v315_v62, %v164_v45 }
 0x3d5   :  { %v325_v4 = vsel %vm72_vm1, %v321_v3, 0.0  ;;  %v322_v5 = vadd.f32 %v318_v1, %v165_v46 }
 0x3d6   :  { %326 = vadd.xlane.f32.xlu0 %v325_v4 }
 0x3d7   :  { %v328_v6 = vsel %vm72_vm1, %v322_v5, 0.0 }
 0x3d8   :  { %329 = vadd.xlane.f32.xlu1 %v328_v6 }
 0x463   :  { %v327_v7 = vpop.xlane.xlu0 %326 }
 0x464   :  { %v331_v8 = vmul.f32 0.03125, %v327_v7 }
 0x465   :  { %v330_v9 = vpop.xlane.xlu1 %329 }
 0x466   :  { %v333_v10 = vsub.f32 %v321_v3, %v331_v8  ;;  %v332_v11 = vmul.f32 0.03125, %v330_v9 }
 0x468   :  { %v334_v12 = vsub.f32 %v322_v5, %v332_v11  ;;  %v335_v13 = vmul.f32 %v333_v10, %v333_v10 }
 0x46a   :  { %v337_v14 = vsel %vm72_vm1, %v335_v13, 0.0  ;;  %v336_v15 = vmul.f32 %v334_v12, %v334_v12 }
 0x46b   :  { %338 = vadd.xlane.f32.xlu0 %v337_v14 }
 0x46c   :  { %v340_v16 = vsel %vm72_vm1, %v336_v15, 0.0 }
 0x46d   :  { %341 = vadd.xlane.f32.xlu1 %v340_v16 }
 0x4f8   :  { %v339_v17 = vpop.xlane.xlu0 %338 }
 0x4f9   :  { %v343_v18 = vmul.f32 0.03125, %v339_v17 }
 0x4fa   :  { %v342_v19 = vpop.xlane.xlu1 %341 }
 0x4fb   :  { %v345_v20 = vadd.f32 1e-05, %v343_v18  ;;  %v344_v21 = vmul.f32 0.03125, %v342_v19 }
 0x4fd   :  { %446 = vrsqrt.f32 %v345_v20  ;;  %v346_v22 = vadd.f32 1e-05, %v344_v21 }
 0x4ff   :  { %448 = vrsqrt.f32 %v346_v22 }
 0x507   :  { %v447_v23 = vpop.eup %446 }
 0x508   :  { %v349_v25 = vmul.f32 %v447_v23, %v333_v10 }
 0x509   :  { %v449_v26 = vpop.eup %448 }
 0x50a   :  { %v357_v28 = vmul.f32 %v390_v24, %v349_v25  ;;  %v350_v29 = vmul.f32 %v449_v26, %v334_v12 }
 0x50c   :  { %v365_v30 = vadd.f32 %v391_v27, %v357_v28  ;;  %v358_v31 = vmul.f32 %v390_v24, %v350_v29 }
 0x50e   :  { %367 = vst.msk [vmem:[%s612_s12] sm:$0xff] %vm72_vm1, %v365_v30  ;;  %v366_v32 = vadd.f32 %v391_v27, %v358_v31 }
 0x510   :  { %368 = vst.msk [vmem:[%s612_s12 + $0x8] sm:$0xff] %vm72_vm1, %v366_v32 }

</bundles_post_ra>
